<compile_context>
chip_gen: v7x
topology: tpu7x:2x2x1
jax: 0.10.0
libtpu: 0.0.40
codegen_flags: <defaults>
</compile_context>

<pallas_src>
import math
import functools

import jax
import jax.numpy as jnp
from jax.experimental import pallas as pl
from jax.experimental.pallas import tpu as pltpu


# ----------------------------------------------------------------------------
# Fused Pallas kernel: all encoder layers + decoder
# ----------------------------------------------------------------------------
def _layernorm(x, w, b, eps=1e-5):
    mu = jnp.mean(x, axis=-1, keepdims=True)
    var = jnp.mean((x - mu) ** 2, axis=-1, keepdims=True)
    return (x - mu) * jax.lax.rsqrt(var + eps) * w + b


def fused_transformer_kernel(x_ref, padb_ref,
                             wqkv_ref, bqkv_ref, wo_ref, bo_ref,
                             ln1w_ref, ln1b_ref, w1_ref, b1_ref,
                             w2_ref, b2_ref, ln2w_ref, ln2b_ref,
                             dec_w_ref, dec_b_ref,
                             o_ref, *, num_heads, batch, seq, num_layers, mlm):
    x = x_ref[...]                          # (B*S, D) flattened tokens
    padb = padb_ref[...]                    # (B, S) additive key-pad bias (0 / -1e30)
    D = x.shape[-1]
    hd = D // num_heads
    scale = 1.0 / math.sqrt(hd)

    # Causal mask built in-kernel (no O(B*S^2) DMA). Large finite negative
    # instead of -inf so an all-masked row can never produce NaN.
    if mlm:
        causal = jnp.zeros((seq, seq), jnp.float32)
    else:
        row = jax.lax.broadcasted_iota(jnp.int32, (seq, seq), 0)
        col = jax.lax.broadcasted_iota(jnp.int32, (seq, seq), 1)
        causal = jnp.where(col > row, jnp.float32(-1e30), jnp.float32(0.0))

    for l in range(num_layers):             # static loop: weights are static ref slices
        # ---- multi-head self attention (post-norm encoder layer) ----
        qkv = jnp.dot(x, wqkv_ref[l], preferred_element_type=jnp.float32) + bqkv_ref[l]
        q = qkv[:, 0:D] * scale             # scale hoisted out of the head loop
        k = qkv[:, D:2 * D]
        v = qkv[:, 2 * D:3 * D]

        attn_rows = []
        for b in range(batch):
            tsl = slice(b * seq, (b + 1) * seq)
            qb, kb, vb = q[tsl], k[tsl], v[tsl]
            bias_b = causal + padb[b:b + 1, :]               # (S, S)
            head_outs = []
            for h in range(num_heads):
                hsl = slice(h * hd, (h + 1) * hd)
                s = jax.lax.dot_general(qb[:, hsl], kb[:, hsl],
                                        (((1,), (1,)), ((), ())),
                                        preferred_element_type=jnp.float32) + bias_b
                m = jnp.max(s, axis=-1, keepdims=True)
                e = jnp.exp(s - m)
                denom = jnp.sum(e, axis=-1, keepdims=True)
                p = e * pl.reciprocal(denom, approx=True)    # EUP, off the VPU path
                head_outs.append(jnp.dot(p, vb[:, hsl],
                                         preferred_element_type=jnp.float32))
            attn_rows.append(jnp.concatenate(head_outs, axis=-1))   # (S, D)
        attn = jnp.concatenate(attn_rows, axis=0)                   # (B*S, D)
        # Single fused output projection (instead of per-head matmul+add).
        attn = jnp.dot(attn, wo_ref[l], preferred_element_type=jnp.float32) + bo_ref[l]

        y = _layernorm(x + attn, ln1w_ref[l], ln1b_ref[l])

        # ---- feed-forward ----
        h1 = jnp.maximum(
            jnp.dot(y, w1_ref[l], preferred_element_type=jnp.float32) + b1_ref[l], 0.0)
        f = jnp.dot(h1, w2_ref[l], preferred_element_type=jnp.float32) + b2_ref[l]
        x = _layernorm(y + f, ln2w_ref[l], ln2b_ref[l])

    # ---- decoder (vocab projection), fused into the same kernel ----
    logits = jnp.dot(x, dec_w_ref[...], preferred_element_type=jnp.float32) + dec_b_ref[...]
    o_ref[...] = logits.astype(o_ref.dtype)


def run_fused_transformer(x2d, pad_bias, layers, dec_w, dec_b, *,
                          num_heads, batch, seq, mlm):
    N, D = x2d.shape
    L = layers['wqkv'].shape[0]
    H = layers['w1'].shape[-1]
    V = dec_w.shape[1]

    def full(shape):
        return pl.BlockSpec(shape, lambda i, _n=len(shape): (0,) * _n)

    kernel = functools.partial(fused_transformer_kernel, num_heads=num_heads,
                               batch=batch, seq=seq, num_layers=L, mlm=mlm)
    return pl.pallas_call(
        kernel,
        out_shape=jax.ShapeDtypeStruct((N, V), jnp.float32),
        grid=(1,),
        in_specs=[
            full((N, D)),                                   # flattened activations
            full((batch, seq)),                             # additive key-pad bias
            full((L, D, 3 * D)), full((L, 1, 3 * D)),       # in_proj (stacked per layer)
            full((L, D, D)), full((L, 1, D)),               # out_proj
            full((L, 1, D)), full((L, 1, D)),               # ln1
            full((L, D, H)), full((L, 1, H)),               # linear1
            full((L, H, D)), full((L, 1, D)),               # linear2
            full((L, 1, D)), full((L, 1, D)),               # ln2
            full((D, V)), full((1, V)),                     # decoder
        ],
        out_specs=full((N, V)),
        compiler_params=pltpu.CompilerParams(dimension_semantics=("arbitrary",)),
    )(x2d, pad_bias, layers['wqkv'], layers['bqkv'], layers['wo'], layers['bo'],
      layers['ln1w'], layers['ln1b'], layers['w1'], layers['b1'],
      layers['w2'], layers['b2'], layers['ln2w'], layers['ln2b'],
      dec_w, dec_b)


# ----------------------------------------------------------------------------
# Glue: embeddings + sin/cos encodings (plain JAX, runs inside the same jit)
# ----------------------------------------------------------------------------
def sincos_encoding(pos, dim, base):
    denom = jnp.exp(jnp.arange(0, dim, 2, dtype=jnp.float32) * (-math.log(base) / dim))
    ang = pos[..., None] * denom
    enc = jnp.zeros(pos.shape + (dim,), jnp.float32)
    enc = enc.at[..., 0::2].set(jnp.sin(ang))
    enc = enc.at[..., 1::2].set(jnp.cos(ang))
    return enc


def embed(params, cfg, call, entry, ret, time_in, proc, pid, tid):
    B, S = call.shape
    emb = params['emb_call'][call]
    emb = emb + params['emb_entry'][entry]
    emb = emb + params['emb_ret'][ret]
    emb = jnp.concatenate([emb, params['emb_proc'][proc]], -1)
    pid_enc = sincos_encoding(pid.astype(jnp.float32), cfg['emb_pid'], 1000.0)
    tid_enc = sincos_encoding(tid.astype(jnp.float32), cfg['emb_tid'], 1000.0)
    order = jnp.arange(S, dtype=jnp.float32)
    order_enc = jnp.broadcast_to(
        sincos_encoding(order, cfg['emb_order'], 10000.0)[None], (B, S, cfg['emb_order']))
    time_enc = sincos_encoding(time_in.astype(jnp.float32) / 1000.0, cfg['emb_time'], 10000.0)
    emb = jnp.concatenate([emb, pid_enc, tid_enc, order_enc, time_enc], -1)
    return emb.astype(jnp.float32)   # dropout = identity (eval)


def transformer_forward(params, layers, call, entry, ret, time_in,
                        proc, pid, tid, pad_mask, *, cfg, mlm):
    emb = embed(params, cfg, call, entry, ret, time_in, proc, pid, tid)   # (B, S, D)
    B, S, D = emb.shape
    pad_bias = jnp.where(pad_mask, jnp.float32(-1e30), jnp.float32(0.0))  # (B, S)
    logits = run_fused_transformer(
        emb.reshape(B * S, D), pad_bias, layers,
        params['dec_w'], params['dec_b'],
        num_heads=cfg['heads'], batch=B, seq=S, mlm=mlm)
    return logits.reshape(B, S, -1)


# ----------------------------------------------------------------------------
if __name__ == "__main__":
    B, S = 2, 8
    n_syscall, n_process = 32, 8
    cfg = dict(emb_sys=16, emb_proc=16, emb_pid=8, emb_tid=8, emb_order=8,
               emb_time=8, heads=4, hiddens=128, layers=2)
    D = cfg['emb_sys'] + cfg['emb_proc'] + cfg['emb_pid'] + cfg['emb_tid'] \
        + cfg['emb_order'] + cfg['emb_time']          # 64

    keys = iter(jax.random.split(jax.random.PRNGKey(0), 32))

    def xavier(shape):
        a = math.sqrt(6.0 / (shape[0] + shape[1]))
        return jax.random.uniform(next(keys), shape, jnp.float32, -a, a)

    params = {
        'emb_call': xavier((n_syscall, cfg['emb_sys'])),
        'emb_entry': xavier((3, cfg['emb_sys'])),
        'emb_ret': xavier((3, cfg['emb_sys'])),
        'emb_proc': xavier((n_process, cfg['emb_proc'])),
        'dec_w': xavier((D, n_syscall)),
        'dec_b': jnp.zeros((1, n_syscall), jnp.float32),
    }
    layer_params = []
    for _ in range(cfg['layers']):
        layer_params.append({
            'wqkv': xavier((D, 3 * D)), 'bqkv': jnp.zeros((1, 3 * D), jnp.float32),
            'wo': xavier((D, D)),       'bo': jnp.zeros((1, D), jnp.float32),
            'ln1w': jnp.ones((1, D), jnp.float32), 'ln1b': jnp.zeros((1, D), jnp.float32),
            'w1': xavier((D, cfg['hiddens'])), 'b1': jnp.zeros((1, cfg['hiddens']), jnp.float32),
            'w2': xavier((cfg['hiddens'], D)), 'b2': jnp.zeros((1, D), jnp.float32),
            'ln2w': jnp.ones((1, D), jnp.float32), 'ln2b': jnp.zeros((1, D), jnp.float32),
        })
    # Stack per-layer weights so the fused kernel keeps every layer resident in VMEM.
    layers = {k: jnp.stack([lp[k] for lp in layer_params]) for k in layer_params[0]}

    ik = jax.random.split(jax.random.PRNGKey(1), 8)
    call = jax.random.randint(ik[0], (B, S), 1, n_syscall)
    entry = jax.random.randint(ik[1], (B, S), 0, 3)
    ret = jax.random.randint(ik[2], (B, S), 0, 3)
    time_in = jax.random.randint(ik[3], (B, S), 0, 1_000_000).astype(jnp.float32)
    proc = jax.random.randint(ik[4], (B, S), 0, n_process)
    pid = jax.random.randint(ik[5], (B, S), 0, 5000).astype(jnp.float32)
    tid = jax.random.randint(ik[6], (B, S), 0, 5000).astype(jnp.float32)
    pad_mask = jnp.zeros((B, S), jnp.bool_).at[1, S - 2:].set(True)  # True = ignore key

    fwd = jax.jit(functools.partial(transformer_forward, cfg=cfg, mlm=False))
    out = fwd(params, layers, call, entry, ret, time_in, proc, pid, tid, pad_mask)
    out = jax.block_until_ready(out)
    assert out.shape == (B, S, n_syscall)
    assert bool(jnp.all(jnp.isfinite(out)))
    print("KERNEL_OK")
</pallas_src>

<mosaic_0001>
module attributes {stable_mosaic.version = 11 : i64} {
  func.func @fused_transformer_kernel(%arg0: i32, %arg1: memref<16x64xf32, #tpu.memory_space<vmem>>, %arg2: memref<2x8xf32, #tpu.memory_space<vmem>>, %arg3: memref<2x64x192xf32, #tpu.memory_space<vmem>>, %arg4: memref<2x1x192xf32, #tpu.memory_space<vmem>>, %arg5: memref<2x64x64xf32, #tpu.memory_space<vmem>>, %arg6: memref<2x1x64xf32, #tpu.memory_space<vmem>>, %arg7: memref<2x1x64xf32, #tpu.memory_space<vmem>>, %arg8: memref<2x1x64xf32, #tpu.memory_space<vmem>>, %arg9: memref<2x64x128xf32, #tpu.memory_space<vmem>>, %arg10: memref<2x1x128xf32, #tpu.memory_space<vmem>>, %arg11: memref<2x128x64xf32, #tpu.memory_space<vmem>>, %arg12: memref<2x1x64xf32, #tpu.memory_space<vmem>>, %arg13: memref<2x1x64xf32, #tpu.memory_space<vmem>>, %arg14: memref<2x1x64xf32, #tpu.memory_space<vmem>>, %arg15: memref<64x32xf32, #tpu.memory_space<vmem>>, %arg16: memref<1x32xf32, #tpu.memory_space<vmem>>, %arg17: memref<16x32xf32, #tpu.memory_space<vmem>>) attributes {dimension_semantics = [#tpu.dimension_semantics<arbitrary>], iteration_bounds = array<i64: 1>, scalar_prefetch = 0 : i64, scratch_operands = 0 : i64, tpu.core_type = #tpu.core_type<tc>, window_params = [{pipeline_mode = #tpu.pipeline_mode<synchronous>, transform_indices = @transform_0, window_bounds = array<i64: 16, 64>}, {pipeline_mode = #tpu.pipeline_mode<synchronous>, transform_indices = @transform_1, window_bounds = array<i64: 2, 8>}, {pipeline_mode = #tpu.pipeline_mode<synchronous>, transform_indices = @transform_2, window_bounds = array<i64: 2, 64, 192>}, {pipeline_mode = #tpu.pipeline_mode<synchronous>, transform_indices = @transform_3, window_bounds = array<i64: 2, 1, 192>}, {pipeline_mode = #tpu.pipeline_mode<synchronous>, transform_indices = @transform_4, window_bounds = array<i64: 2, 64, 64>}, {pipeline_mode = #tpu.pipeline_mode<synchronous>, transform_indices = @transform_5, window_bounds = array<i64: 2, 1, 64>}, {pipeline_mode = #tpu.pipeline_mode<synchronous>, transform_indices = @transform_6, window_bounds = array<i64: 2, 1, 64>}, {pipeline_mode = #tpu.pipeline_mode<synchronous>, transform_indices = @transform_7, window_bounds = array<i64: 2, 1, 64>}, {pipeline_mode = #tpu.pipeline_mode<synchronous>, transform_indices = @transform_8, window_bounds = array<i64: 2, 64, 128>}, {pipeline_mode = #tpu.pipeline_mode<synchronous>, transform_indices = @transform_9, window_bounds = array<i64: 2, 1, 128>}, {pipeline_mode = #tpu.pipeline_mode<synchronous>, transform_indices = @transform_10, window_bounds = array<i64: 2, 128, 64>}, {pipeline_mode = #tpu.pipeline_mode<synchronous>, transform_indices = @transform_11, window_bounds = array<i64: 2, 1, 64>}, {pipeline_mode = #tpu.pipeline_mode<synchronous>, transform_indices = @transform_12, window_bounds = array<i64: 2, 1, 64>}, {pipeline_mode = #tpu.pipeline_mode<synchronous>, transform_indices = @transform_13, window_bounds = array<i64: 2, 1, 64>}, {pipeline_mode = #tpu.pipeline_mode<synchronous>, transform_indices = @transform_14, window_bounds = array<i64: 64, 32>}, {pipeline_mode = #tpu.pipeline_mode<synchronous>, transform_indices = @transform_15, window_bounds = array<i64: 1, 32>}, {pipeline_mode = #tpu.pipeline_mode<synchronous>, transform_indices = @transform_16, window_bounds = array<i64: 16, 32>}]} {
    %c0 = arith.constant 0 : index
    %c0_0 = arith.constant 0 : index
    %0 = vector.load %arg1[%c0, %c0_0] : memref<16x64xf32, #tpu.memory_space<vmem>>, vector<16x64xf32>
    %c0_1 = arith.constant 0 : index
    %c0_2 = arith.constant 0 : index
    %1 = vector.load %arg2[%c0_1, %c0_2] : memref<2x8xf32, #tpu.memory_space<vmem>>, vector<2x8xf32>
    %2 = tpu.iota {dimensions = array<i32: 0>} : vector<8x8xi32>
    %3 = tpu.iota {dimensions = array<i32: 1>} : vector<8x8xi32>
    %4 = arith.cmpi sgt, %3, %2 : vector<8x8xi32>
    %cst = arith.constant -1.000000e+30 : f32
    %cst_3 = arith.constant 0.000000e+00 : f32
    %5 = vector.broadcast %cst : f32 to vector<8x8xf32>
    %6 = vector.broadcast %cst_3 : f32 to vector<8x8xf32>
    %7 = arith.select %4, %5, %6 : vector<8x8xi1>, vector<8x8xf32>
    %c0_4 = arith.constant 0 : index
    %c0_5 = arith.constant 0 : index
    %c0_6 = arith.constant 0 : index
    %8 = vector.load %arg3[%c0_4, %c0_5, %c0_6] : memref<2x64x192xf32, #tpu.memory_space<vmem>>, vector<1x64x192xf32>
    %9 = vector.shape_cast %8 : vector<1x64x192xf32> to vector<64x192xf32>
    %cst_7 = arith.constant dense<0.000000e+00> : vector<16x192xf32>
    %10 = tpu.matmul %0, %9, %cst_7 {dimension_numbers = #tpu.dot_dimension_numbers<[1], [0], [0], [1], [0, 0, 1, 1], [], []>} : vector<16x64xf32>, vector<64x192xf32>, vector<16x192xf32> -> vector<16x192xf32>
    %c0_8 = arith.constant 0 : index
    %c0_9 = arith.constant 0 : index
    %c0_10 = arith.constant 0 : index
    %11 = vector.load %arg4[%c0_8, %c0_9, %c0_10] : memref<2x1x192xf32, #tpu.memory_space<vmem>>, vector<1x1x192xf32>
    %12 = vector.shape_cast %11 : vector<1x1x192xf32> to vector<1x192xf32>
    %13 = vector.broadcast %12 : vector<1x192xf32> to vector<16x192xf32>
    %14 = arith.addf %10, %13 : vector<16x192xf32>
    %15 = vector.extract_strided_slice %14 {offsets = [0, 0], sizes = [16, 64], strides = [1, 1]} : vector<16x192xf32> to vector<16x64xf32>
    %cst_11 = arith.constant 2.500000e-01 : f32
    %16 = vector.broadcast %cst_11 : f32 to vector<16x64xf32>
    %17 = arith.mulf %15, %16 : vector<16x64xf32>
    %18 = vector.extract_strided_slice %14 {offsets = [0, 64], sizes = [16, 64], strides = [1, 1]} : vector<16x192xf32> to vector<16x64xf32>
    %19 = vector.extract_strided_slice %14 {offsets = [0, 128], sizes = [16, 64], strides = [1, 1]} : vector<16x192xf32> to vector<16x64xf32>
    %20 = vector.extract_strided_slice %17 {offsets = [0, 0], sizes = [8, 64], strides = [1, 1]} : vector<16x64xf32> to vector<8x64xf32>
    %21 = vector.extract_strided_slice %18 {offsets = [0, 0], sizes = [8, 64], strides = [1, 1]} : vector<16x64xf32> to vector<8x64xf32>
    %22 = vector.extract_strided_slice %19 {offsets = [0, 0], sizes = [8, 64], strides = [1, 1]} : vector<16x64xf32> to vector<8x64xf32>
    %23 = vector.extract_strided_slice %1 {offsets = [0, 0], sizes = [1, 8], strides = [1, 1]} : vector<2x8xf32> to vector<1x8xf32>
    %24 = vector.broadcast %23 : vector<1x8xf32> to vector<8x8xf32>
    %25 = arith.addf %7, %24 : vector<8x8xf32>
    %26 = vector.extract_strided_slice %20 {offsets = [0, 0], sizes = [8, 16], strides = [1, 1]} : vector<8x64xf32> to vector<8x16xf32>
    %27 = vector.extract_strided_slice %21 {offsets = [0, 0], sizes = [8, 16], strides = [1, 1]} : vector<8x64xf32> to vector<8x16xf32>
    %cst_12 = arith.constant dense<0.000000e+00> : vector<8x8xf32>
    %28 = tpu.matmul %26, %27, %cst_12 {dimension_numbers = #tpu.dot_dimension_numbers<[1], [1], [0], [0], [0, 0, 1, 0], [], []>} : vector<8x16xf32>, vector<8x16xf32>, vector<8x8xf32> -> vector<8x8xf32>
    %29 = arith.addf %28, %25 : vector<8x8xf32>
    %cst_13 = arith.constant dense<0xFF800000> : vector<8xf32>
    %30 = vector.multi_reduction <maximumf>, %29, %cst_13 [1] : vector<8x8xf32> to vector<8xf32>
    %31 = vector.shape_cast %30 : vector<8xf32> to vector<8x1xf32>
    %32 = vector.broadcast %31 : vector<8x1xf32> to vector<8x8xf32>
    %33 = arith.subf %29, %32 : vector<8x8xf32>
    %34 = math.exp %33 : vector<8x8xf32>
    %cst_14 = arith.constant dense<0.000000e+00> : vector<8xf32>
    %35 = vector.multi_reduction <add>, %34, %cst_14 [1] : vector<8x8xf32> to vector<8xf32>
    %36 = vector.shape_cast %35 : vector<8xf32> to vector<8x1xf32>
    %37 = tpu.reciprocal %36 {approx = true} : vector<8x1xf32> -> vector<8x1xf32>
    %38 = vector.broadcast %37 : vector<8x1xf32> to vector<8x8xf32>
    %39 = arith.mulf %34, %38 : vector<8x8xf32>
    %40 = vector.extract_strided_slice %22 {offsets = [0, 0], sizes = [8, 16], strides = [1, 1]} : vector<8x64xf32> to vector<8x16xf32>
    %cst_15 = arith.constant dense<0.000000e+00> : vector<8x16xf32>
    %41 = tpu.matmul %39, %40, %cst_15 {dimension_numbers = #tpu.dot_dimension_numbers<[1], [0], [0], [1], [0, 0, 1, 1], [], []>} : vector<8x8xf32>, vector<8x16xf32>, vector<8x16xf32> -> vector<8x16xf32>
    %42 = vector.extract_strided_slice %20 {offsets = [0, 16], sizes = [8, 16], strides = [1, 1]} : vector<8x64xf32> to vector<8x16xf32>
    %43 = vector.extract_strided_slice %21 {offsets = [0, 16], sizes = [8, 16], strides = [1, 1]} : vector<8x64xf32> to vector<8x16xf32>
    %cst_16 = arith.constant dense<0.000000e+00> : vector<8x8xf32>
    %44 = tpu.matmul %42, %43, %cst_16 {dimension_numbers = #tpu.dot_dimension_numbers<[1], [1], [0], [0], [0, 0, 1, 0], [], []>} : vector<8x16xf32>, vector<8x16xf32>, vector<8x8xf32> -> vector<8x8xf32>
    %45 = arith.addf %44, %25 : vector<8x8xf32>
    %cst_17 = arith.constant dense<0xFF800000> : vector<8xf32>
    %46 = vector.multi_reduction <maximumf>, %45, %cst_17 [1] : vector<8x8xf32> to vector<8xf32>
    %47 = vector.shape_cast %46 : vector<8xf32> to vector<8x1xf32>
    %48 = vector.broadcast %47 : vector<8x1xf32> to vector<8x8xf32>
    %49 = arith.subf %45, %48 : vector<8x8xf32>
    %50 = math.exp %49 : vector<8x8xf32>
    %cst_18 = arith.constant dense<0.000000e+00> : vector<8xf32>
    %51 = vector.multi_reduction <add>, %50, %cst_18 [1] : vector<8x8xf32> to vector<8xf32>
    %52 = vector.shape_cast %51 : vector<8xf32> to vector<8x1xf32>
    %53 = tpu.reciprocal %52 {approx = true} : vector<8x1xf32> -> vector<8x1xf32>
    %54 = vector.broadcast %53 : vector<8x1xf32> to vector<8x8xf32>
    %55 = arith.mulf %50, %54 : vector<8x8xf32>
    %56 = vector.extract_strided_slice %22 {offsets = [0, 16], sizes = [8, 16], strides = [1, 1]} : vector<8x64xf32> to vector<8x16xf32>
    %cst_19 = arith.constant dense<0.000000e+00> : vector<8x16xf32>
    %57 = tpu.matmul %55, %56, %cst_19 {dimension_numbers = #tpu.dot_dimension_numbers<[1], [0], [0], [1], [0, 0, 1, 1], [], []>} : vector<8x8xf32>, vector<8x16xf32>, vector<8x16xf32> -> vector<8x16xf32>
    %58 = vector.extract_strided_slice %20 {offsets = [0, 32], sizes = [8, 16], strides = [1, 1]} : vector<8x64xf32> to vector<8x16xf32>
    %59 = vector.extract_strided_slice %21 {offsets = [0, 32], sizes = [8, 16], strides = [1, 1]} : vector<8x64xf32> to vector<8x16xf32>
    %cst_20 = arith.constant dense<0.000000e+00> : vector<8x8xf32>
    %60 = tpu.matmul %58, %59, %cst_20 {dimension_numbers = #tpu.dot_dimension_numbers<[1], [1], [0], [0], [0, 0, 1, 0], [], []>} : vector<8x16xf32>, vector<8x16xf32>, vector<8x8xf32> -> vector<8x8xf32>
    %61 = arith.addf %60, %25 : vector<8x8xf32>
    %cst_21 = arith.constant dense<0xFF800000> : vector<8xf32>
    %62 = vector.multi_reduction <maximumf>, %61, %cst_21 [1] : vector<8x8xf32> to vector<8xf32>
    %63 = vector.shape_cast %62 : vector<8xf32> to vector<8x1xf32>
    %64 = vector.broadcast %63 : vector<8x1xf32> to vector<8x8xf32>
    %65 = arith.subf %61, %64 : vector<8x8xf32>
    %66 = math.exp %65 : vector<8x8xf32>
    %cst_22 = arith.constant dense<0.000000e+00> : vector<8xf32>
    %67 = vector.multi_reduction <add>, %66, %cst_22 [1] : vector<8x8xf32> to vector<8xf32>
    %68 = vector.shape_cast %67 : vector<8xf32> to vector<8x1xf32>
    %69 = tpu.reciprocal %68 {approx = true} : vector<8x1xf32> -> vector<8x1xf32>
    %70 = vector.broadcast %69 : vector<8x1xf32> to vector<8x8xf32>
    %71 = arith.mulf %66, %70 : vector<8x8xf32>
    %72 = vector.extract_strided_slice %22 {offsets = [0, 32], sizes = [8, 16], strides = [1, 1]} : vector<8x64xf32> to vector<8x16xf32>
    %cst_23 = arith.constant dense<0.000000e+00> : vector<8x16xf32>
    %73 = tpu.matmul %71, %72, %cst_23 {dimension_numbers = #tpu.dot_dimension_numbers<[1], [0], [0], [1], [0, 0, 1, 1], [], []>} : vector<8x8xf32>, vector<8x16xf32>, vector<8x16xf32> -> vector<8x16xf32>
    %74 = vector.extract_strided_slice %20 {offsets = [0, 48], sizes = [8, 16], strides = [1, 1]} : vector<8x64xf32> to vector<8x16xf32>
    %75 = vector.extract_strided_slice %21 {offsets = [0, 48], sizes = [8, 16], strides = [1, 1]} : vector<8x64xf32> to vector<8x16xf32>
    %cst_24 = arith.constant dense<0.000000e+00> : vector<8x8xf32>
    %76 = tpu.matmul %74, %75, %cst_24 {dimension_numbers = #tpu.dot_dimension_numbers<[1], [1], [0], [0], [0, 0, 1, 0], [], []>} : vector<8x16xf32>, vector<8x16xf32>, vector<8x8xf32> -> vector<8x8xf32>
    %77 = arith.addf %76, %25 : vector<8x8xf32>
    %cst_25 = arith.constant dense<0xFF800000> : vector<8xf32>
    %78 = vector.multi_reduction <maximumf>, %77, %cst_25 [1] : vector<8x8xf32> to vector<8xf32>
    %79 = vector.shape_cast %78 : vector<8xf32> to vector<8x1xf32>
    %80 = vector.broadcast %79 : vector<8x1xf32> to vector<8x8xf32>
    %81 = arith.subf %77, %80 : vector<8x8xf32>
    %82 = math.exp %81 : vector<8x8xf32>
    %cst_26 = arith.constant dense<0.000000e+00> : vector<8xf32>
    %83 = vector.multi_reduction <add>, %82, %cst_26 [1] : vector<8x8xf32> to vector<8xf32>
    %84 = vector.shape_cast %83 : vector<8xf32> to vector<8x1xf32>
    %85 = tpu.reciprocal %84 {approx = true} : vector<8x1xf32> -> vector<8x1xf32>
    %86 = vector.broadcast %85 : vector<8x1xf32> to vector<8x8xf32>
    %87 = arith.mulf %82, %86 : vector<8x8xf32>
    %88 = vector.extract_strided_slice %22 {offsets = [0, 48], sizes = [8, 16], strides = [1, 1]} : vector<8x64xf32> to vector<8x16xf32>
    %cst_27 = arith.constant dense<0.000000e+00> : vector<8x16xf32>
    %89 = tpu.matmul %87, %88, %cst_27 {dimension_numbers = #tpu.dot_dimension_numbers<[1], [0], [0], [1], [0, 0, 1, 1], [], []>} : vector<8x8xf32>, vector<8x16xf32>, vector<8x16xf32> -> vector<8x16xf32>
    %90 = tpu.concatenate %41, %57, %73, %89 in 1 : vector<8x16xf32>, vector<8x16xf32>, vector<8x16xf32>, vector<8x16xf32> -> vector<8x64xf32>
    %91 = vector.extract_strided_slice %17 {offsets = [8, 0], sizes = [8, 64], strides = [1, 1]} : vector<16x64xf32> to vector<8x64xf32>
    %92 = vector.extract_strided_slice %18 {offsets = [8, 0], sizes = [8, 64], strides = [1, 1]} : vector<16x64xf32> to vector<8x64xf32>
    %93 = vector.extract_strided_slice %19 {offsets = [8, 0], sizes = [8, 64], strides = [1, 1]} : vector<16x64xf32> to vector<8x64xf32>
    %94 = vector.extract_strided_slice %1 {offsets = [1, 0], sizes = [1, 8], strides = [1, 1]} : vector<2x8xf32> to vector<1x8xf32>
    %95 = vector.broadcast %94 : vector<1x8xf32> to vector<8x8xf32>
    %96 = arith.addf %7, %95 : vector<8x8xf32>
    %97 = vector.extract_strided_slice %91 {offsets = [0, 0], sizes = [8, 16], strides = [1, 1]} : vector<8x64xf32> to vector<8x16xf32>
    %98 = vector.extract_strided_slice %92 {offsets = [0, 0], sizes = [8, 16], strides = [1, 1]} : vector<8x64xf32> to vector<8x16xf32>
    %cst_28 = arith.constant dense<0.000000e+00> : vector<8x8xf32>
    %99 = tpu.matmul %97, %98, %cst_28 {dimension_numbers = #tpu.dot_dimension_numbers<[1], [1], [0], [0], [0, 0, 1, 0], [], []>} : vector<8x16xf32>, vector<8x16xf32>, vector<8x8xf32> -> vector<8x8xf32>
    %100 = arith.addf %99, %96 : vector<8x8xf32>
    %cst_29 = arith.constant dense<0xFF800000> : vector<8xf32>
    %101 = vector.multi_reduction <maximumf>, %100, %cst_29 [1] : vector<8x8xf32> to vector<8xf32>
    %102 = vector.shape_cast %101 : vector<8xf32> to vector<8x1xf32>
    %103 = vector.broadcast %102 : vector<8x1xf32> to vector<8x8xf32>
    %104 = arith.subf %100, %103 : vector<8x8xf32>
    %105 = math.exp %104 : vector<8x8xf32>
    %cst_30 = arith.constant dense<0.000000e+00> : vector<8xf32>
    %106 = vector.multi_reduction <add>, %105, %cst_30 [1] : vector<8x8xf32> to vector<8xf32>
    %107 = vector.shape_cast %106 : vector<8xf32> to vector<8x1xf32>
    %108 = tpu.reciprocal %107 {approx = true} : vector<8x1xf32> -> vector<8x1xf32>
    %109 = vector.broadcast %108 : vector<8x1xf32> to vector<8x8xf32>
    %110 = arith.mulf %105, %109 : vector<8x8xf32>
    %111 = vector.extract_strided_slice %93 {offsets = [0, 0], sizes = [8, 16], strides = [1, 1]} : vector<8x64xf32> to vector<8x16xf32>
    %cst_31 = arith.constant dense<0.000000e+00> : vector<8x16xf32>
    %112 = tpu.matmul %110, %111, %cst_31 {dimension_numbers = #tpu.dot_dimension_numbers<[1], [0], [0], [1], [0, 0, 1, 1], [], []>} : vector<8x8xf32>, vector<8x16xf32>, vector<8x16xf32> -> vector<8x16xf32>
    %113 = vector.extract_strided_slice %91 {offsets = [0, 16], sizes = [8, 16], strides = [1, 1]} : vector<8x64xf32> to vector<8x16xf32>
    %114 = vector.extract_strided_slice %92 {offsets = [0, 16], sizes = [8, 16], strides = [1, 1]} : vector<8x64xf32> to vector<8x16xf32>
    %cst_32 = arith.constant dense<0.000000e+00> : vector<8x8xf32>
    %115 = tpu.matmul %113, %114, %cst_32 {dimension_numbers = #tpu.dot_dimension_numbers<[1], [1], [0], [0], [0, 0, 1, 0], [], []>} : vector<8x16xf32>, vector<8x16xf32>, vector<8x8xf32> -> vector<8x8xf32>
    %116 = arith.addf %115, %96 : vector<8x8xf32>
    %cst_33 = arith.constant dense<0xFF800000> : vector<8xf32>
    %117 = vector.multi_reduction <maximumf>, %116, %cst_33 [1] : vector<8x8xf32> to vector<8xf32>
    %118 = vector.shape_cast %117 : vector<8xf32> to vector<8x1xf32>
    %119 = vector.broadcast %118 : vector<8x1xf32> to vector<8x8xf32>
    %120 = arith.subf %116, %119 : vector<8x8xf32>
    %121 = math.exp %120 : vector<8x8xf32>
    %cst_34 = arith.constant dense<0.000000e+00> : vector<8xf32>
    %122 = vector.multi_reduction <add>, %121, %cst_34 [1] : vector<8x8xf32> to vector<8xf32>
    %123 = vector.shape_cast %122 : vector<8xf32> to vector<8x1xf32>
    %124 = tpu.reciprocal %123 {approx = true} : vector<8x1xf32> -> vector<8x1xf32>
    %125 = vector.broadcast %124 : vector<8x1xf32> to vector<8x8xf32>
    %126 = arith.mulf %121, %125 : vector<8x8xf32>
    %127 = vector.extract_strided_slice %93 {offsets = [0, 16], sizes = [8, 16], strides = [1, 1]} : vector<8x64xf32> to vector<8x16xf32>
    %cst_35 = arith.constant dense<0.000000e+00> : vector<8x16xf32>
    %128 = tpu.matmul %126, %127, %cst_35 {dimension_numbers = #tpu.dot_dimension_numbers<[1], [0], [0], [1], [0, 0, 1, 1], [], []>} : vector<8x8xf32>, vector<8x16xf32>, vector<8x16xf32> -> vector<8x16xf32>
    %129 = vector.extract_strided_slice %91 {offsets = [0, 32], sizes = [8, 16], strides = [1, 1]} : vector<8x64xf32> to vector<8x16xf32>
    %130 = vector.extract_strided_slice %92 {offsets = [0, 32], sizes = [8, 16], strides = [1, 1]} : vector<8x64xf32> to vector<8x16xf32>
    %cst_36 = arith.constant dense<0.000000e+00> : vector<8x8xf32>
    %131 = tpu.matmul %129, %130, %cst_36 {dimension_numbers = #tpu.dot_dimension_numbers<[1], [1], [0], [0], [0, 0, 1, 0], [], []>} : vector<8x16xf32>, vector<8x16xf32>, vector<8x8xf32> -> vector<8x8xf32>
    %132 = arith.addf %131, %96 : vector<8x8xf32>
    %cst_37 = arith.constant dense<0xFF800000> : vector<8xf32>
    %133 = vector.multi_reduction <maximumf>, %132, %cst_37 [1] : vector<8x8xf32> to vector<8xf32>
    %134 = vector.shape_cast %133 : vector<8xf32> to vector<8x1xf32>
    %135 = vector.broadcast %134 : vector<8x1xf32> to vector<8x8xf32>
    %136 = arith.subf %132, %135 : vector<8x8xf32>
    %137 = math.exp %136 : vector<8x8xf32>
    %cst_38 = arith.constant dense<0.000000e+00> : vector<8xf32>
    %138 = vector.multi_reduction <add>, %137, %cst_38 [1] : vector<8x8xf32> to vector<8xf32>
    %139 = vector.shape_cast %138 : vector<8xf32> to vector<8x1xf32>
    %140 = tpu.reciprocal %139 {approx = true} : vector<8x1xf32> -> vector<8x1xf32>
    %141 = vector.broadcast %140 : vector<8x1xf32> to vector<8x8xf32>
    %142 = arith.mulf %137, %141 : vector<8x8xf32>
    %143 = vector.extract_strided_slice %93 {offsets = [0, 32], sizes = [8, 16], strides = [1, 1]} : vector<8x64xf32> to vector<8x16xf32>
    %cst_39 = arith.constant dense<0.000000e+00> : vector<8x16xf32>
    %144 = tpu.matmul %142, %143, %cst_39 {dimension_numbers = #tpu.dot_dimension_numbers<[1], [0], [0], [1], [0, 0, 1, 1], [], []>} : vector<8x8xf32>, vector<8x16xf32>, vector<8x16xf32> -> vector<8x16xf32>
    %145 = vector.extract_strided_slice %91 {offsets = [0, 48], sizes = [8, 16], strides = [1, 1]} : vector<8x64xf32> to vector<8x16xf32>
    %146 = vector.extract_strided_slice %92 {offsets = [0, 48], sizes = [8, 16], strides = [1, 1]} : vector<8x64xf32> to vector<8x16xf32>
    %cst_40 = arith.constant dense<0.000000e+00> : vector<8x8xf32>
    %147 = tpu.matmul %145, %146, %cst_40 {dimension_numbers = #tpu.dot_dimension_numbers<[1], [1], [0], [0], [0, 0, 1, 0], [], []>} : vector<8x16xf32>, vector<8x16xf32>, vector<8x8xf32> -> vector<8x8xf32>
    %148 = arith.addf %147, %96 : vector<8x8xf32>
    %cst_41 = arith.constant dense<0xFF800000> : vector<8xf32>
    %149 = vector.multi_reduction <maximumf>, %148, %cst_41 [1] : vector<8x8xf32> to vector<8xf32>
    %150 = vector.shape_cast %149 : vector<8xf32> to vector<8x1xf32>
    %151 = vector.broadcast %150 : vector<8x1xf32> to vector<8x8xf32>
    %152 = arith.subf %148, %151 : vector<8x8xf32>
    %153 = math.exp %152 : vector<8x8xf32>
    %cst_42 = arith.constant dense<0.000000e+00> : vector<8xf32>
    %154 = vector.multi_reduction <add>, %153, %cst_42 [1] : vector<8x8xf32> to vector<8xf32>
    %155 = vector.shape_cast %154 : vector<8xf32> to vector<8x1xf32>
    %156 = tpu.reciprocal %155 {approx = true} : vector<8x1xf32> -> vector<8x1xf32>
    %157 = vector.broadcast %156 : vector<8x1xf32> to vector<8x8xf32>
    %158 = arith.mulf %153, %157 : vector<8x8xf32>
    %159 = vector.extract_strided_slice %93 {offsets = [0, 48], sizes = [8, 16], strides = [1, 1]} : vector<8x64xf32> to vector<8x16xf32>
    %cst_43 = arith.constant dense<0.000000e+00> : vector<8x16xf32>
    %160 = tpu.matmul %158, %159, %cst_43 {dimension_numbers = #tpu.dot_dimension_numbers<[1], [0], [0], [1], [0, 0, 1, 1], [], []>} : vector<8x8xf32>, vector<8x16xf32>, vector<8x16xf32> -> vector<8x16xf32>
    %161 = tpu.concatenate %112, %128, %144, %160 in 1 : vector<8x16xf32>, vector<8x16xf32>, vector<8x16xf32>, vector<8x16xf32> -> vector<8x64xf32>
    %162 = tpu.concatenate %90, %161 in 0 : vector<8x64xf32>, vector<8x64xf32> -> vector<16x64xf32>
    %c0_44 = arith.constant 0 : index
    %c0_45 = arith.constant 0 : index
    %c0_46 = arith.constant 0 : index
    %163 = vector.load %arg5[%c0_44, %c0_45, %c0_46] : memref<2x64x64xf32, #tpu.memory_space<vmem>>, vector<1x64x64xf32>
    %164 = vector.shape_cast %163 : vector<1x64x64xf32> to vector<64x64xf32>
    %cst_47 = arith.constant dense<0.000000e+00> : vector<16x64xf32>
    %165 = tpu.matmul %162, %164, %cst_47 {dimension_numbers = #tpu.dot_dimension_numbers<[1], [0], [0], [1], [0, 0, 1, 1], [], []>} : vector<16x64xf32>, vector<64x64xf32>, vector<16x64xf32> -> vector<16x64xf32>
    %c0_48 = arith.constant 0 : index
    %c0_49 = arith.constant 0 : index
    %c0_50 = arith.constant 0 : index
    %166 = vector.load %arg6[%c0_48, %c0_49, %c0_50] : memref<2x1x64xf32, #tpu.memory_space<vmem>>, vector<1x1x64xf32>
    %167 = vector.shape_cast %166 : vector<1x1x64xf32> to vector<1x64xf32>
    %168 = vector.broadcast %167 : vector<1x64xf32> to vector<16x64xf32>
    %169 = arith.addf %165, %168 : vector<16x64xf32>
    %170 = arith.addf %0, %169 : vector<16x64xf32>
    %c0_51 = arith.constant 0 : index
    %c0_52 = arith.constant 0 : index
    %c0_53 = arith.constant 0 : index
    %171 = vector.load %arg7[%c0_51, %c0_52, %c0_53] : memref<2x1x64xf32, #tpu.memory_space<vmem>>, vector<1x1x64xf32>
    %172 = vector.shape_cast %171 : vector<1x1x64xf32> to vector<1x64xf32>
    %c0_54 = arith.constant 0 : index
    %c0_55 = arith.constant 0 : index
    %c0_56 = arith.constant 0 : index
    %173 = vector.load %arg8[%c0_54, %c0_55, %c0_56] : memref<2x1x64xf32, #tpu.memory_space<vmem>>, vector<1x1x64xf32>
    %174 = vector.shape_cast %173 : vector<1x1x64xf32> to vector<1x64xf32>
    %cst_57 = arith.constant dense<0.000000e+00> : vector<16xf32>
    %175 = vector.multi_reduction <add>, %170, %cst_57 [1] : vector<16x64xf32> to vector<16xf32>
    %176 = vector.shape_cast %175 : vector<16xf32> to vector<16x1xf32>
    %cst_58 = arith.constant 6.400000e+01 : f32
    %177 = vector.broadcast %cst_58 : f32 to vector<16x1xf32>
    %178 = arith.divf %176, %177 : vector<16x1xf32>
    %179 = vector.broadcast %178 : vector<16x1xf32> to vector<16x64xf32>
    %180 = arith.subf %170, %179 : vector<16x64xf32>
    %181 = arith.mulf %180, %180 : vector<16x64xf32>
    %cst_59 = arith.constant dense<0.000000e+00> : vector<16xf32>
    %182 = vector.multi_reduction <add>, %181, %cst_59 [1] : vector<16x64xf32> to vector<16xf32>
    %183 = vector.shape_cast %182 : vector<16xf32> to vector<16x1xf32>
    %cst_60 = arith.constant 6.400000e+01 : f32
    %184 = vector.broadcast %cst_60 : f32 to vector<16x1xf32>
    %185 = arith.divf %183, %184 : vector<16x1xf32>
    %186 = vector.broadcast %178 : vector<16x1xf32> to vector<16x64xf32>
    %187 = arith.subf %170, %186 : vector<16x64xf32>
    %cst_61 = arith.constant 9.99999974E-6 : f32
    %188 = vector.broadcast %cst_61 : f32 to vector<16x1xf32>
    %189 = arith.addf %185, %188 : vector<16x1xf32>
    %190 = math.rsqrt %189 : vector<16x1xf32>
    %191 = vector.broadcast %190 : vector<16x1xf32> to vector<16x64xf32>
    %192 = arith.mulf %187, %191 : vector<16x64xf32>
    %193 = vector.broadcast %172 : vector<1x64xf32> to vector<16x64xf32>
    %194 = arith.mulf %192, %193 : vector<16x64xf32>
    %195 = vector.broadcast %174 : vector<1x64xf32> to vector<16x64xf32>
    %196 = arith.addf %194, %195 : vector<16x64xf32>
    %c0_62 = arith.constant 0 : index
    %c0_63 = arith.constant 0 : index
    %c0_64 = arith.constant 0 : index
    %197 = vector.load %arg9[%c0_62, %c0_63, %c0_64] : memref<2x64x128xf32, #tpu.memory_space<vmem>>, vector<1x64x128xf32>
    %198 = vector.shape_cast %197 : vector<1x64x128xf32> to vector<64x128xf32>
    %cst_65 = arith.constant dense<0.000000e+00> : vector<16x128xf32>
    %199 = tpu.matmul %196, %198, %cst_65 {dimension_numbers = #tpu.dot_dimension_numbers<[1], [0], [0], [1], [0, 0, 1, 1], [], []>} : vector<16x64xf32>, vector<64x128xf32>, vector<16x128xf32> -> vector<16x128xf32>
    %c0_66 = arith.constant 0 : index
    %c0_67 = arith.constant 0 : index
    %c0_68 = arith.constant 0 : index
    %200 = vector.load %arg10[%c0_66, %c0_67, %c0_68] : memref<2x1x128xf32, #tpu.memory_space<vmem>>, vector<1x1x128xf32>
    %201 = vector.shape_cast %200 : vector<1x1x128xf32> to vector<1x128xf32>
    %202 = vector.broadcast %201 : vector<1x128xf32> to vector<16x128xf32>
    %203 = arith.addf %199, %202 : vector<16x128xf32>
    %cst_69 = arith.constant 0.000000e+00 : f32
    %204 = vector.broadcast %cst_69 : f32 to vector<16x128xf32>
    %205 = arith.maximumf %203, %204 : vector<16x128xf32>
    %c0_70 = arith.constant 0 : index
    %c0_71 = arith.constant 0 : index
    %c0_72 = arith.constant 0 : index
    %206 = vector.load %arg11[%c0_70, %c0_71, %c0_72] : memref<2x128x64xf32, #tpu.memory_space<vmem>>, vector<1x128x64xf32>
    %207 = vector.shape_cast %206 : vector<1x128x64xf32> to vector<128x64xf32>
    %cst_73 = arith.constant dense<0.000000e+00> : vector<16x64xf32>
    %208 = tpu.matmul %205, %207, %cst_73 {dimension_numbers = #tpu.dot_dimension_numbers<[1], [0], [0], [1], [0, 0, 1, 1], [], []>} : vector<16x128xf32>, vector<128x64xf32>, vector<16x64xf32> -> vector<16x64xf32>
    %c0_74 = arith.constant 0 : index
    %c0_75 = arith.constant 0 : index
    %c0_76 = arith.constant 0 : index
    %209 = vector.load %arg12[%c0_74, %c0_75, %c0_76] : memref<2x1x64xf32, #tpu.memory_space<vmem>>, vector<1x1x64xf32>
    %210 = vector.shape_cast %209 : vector<1x1x64xf32> to vector<1x64xf32>
    %211 = vector.broadcast %210 : vector<1x64xf32> to vector<16x64xf32>
    %212 = arith.addf %208, %211 : vector<16x64xf32>
    %213 = arith.addf %196, %212 : vector<16x64xf32>
    %c0_77 = arith.constant 0 : index
    %c0_78 = arith.constant 0 : index
    %c0_79 = arith.constant 0 : index
    %214 = vector.load %arg13[%c0_77, %c0_78, %c0_79] : memref<2x1x64xf32, #tpu.memory_space<vmem>>, vector<1x1x64xf32>
    %215 = vector.shape_cast %214 : vector<1x1x64xf32> to vector<1x64xf32>
    %c0_80 = arith.constant 0 : index
    %c0_81 = arith.constant 0 : index
    %c0_82 = arith.constant 0 : index
    %216 = vector.load %arg14[%c0_80, %c0_81, %c0_82] : memref<2x1x64xf32, #tpu.memory_space<vmem>>, vector<1x1x64xf32>
    %217 = vector.shape_cast %216 : vector<1x1x64xf32> to vector<1x64xf32>
    %cst_83 = arith.constant dense<0.000000e+00> : vector<16xf32>
    %218 = vector.multi_reduction <add>, %213, %cst_83 [1] : vector<16x64xf32> to vector<16xf32>
    %219 = vector.shape_cast %218 : vector<16xf32> to vector<16x1xf32>
    %cst_84 = arith.constant 6.400000e+01 : f32
    %220 = vector.broadcast %cst_84 : f32 to vector<16x1xf32>
    %221 = arith.divf %219, %220 : vector<16x1xf32>
    %222 = vector.broadcast %221 : vector<16x1xf32> to vector<16x64xf32>
    %223 = arith.subf %213, %222 : vector<16x64xf32>
    %224 = arith.mulf %223, %223 : vector<16x64xf32>
    %cst_85 = arith.constant dense<0.000000e+00> : vector<16xf32>
    %225 = vector.multi_reduction <add>, %224, %cst_85 [1] : vector<16x64xf32> to vector<16xf32>
    %226 = vector.shape_cast %225 : vector<16xf32> to vector<16x1xf32>
    %cst_86 = arith.constant 6.400000e+01 : f32
    %227 = vector.broadcast %cst_86 : f32 to vector<16x1xf32>
    %228 = arith.divf %226, %227 : vector<16x1xf32>
    %229 = vector.broadcast %221 : vector<16x1xf32> to vector<16x64xf32>
    %230 = arith.subf %213, %229 : vector<16x64xf32>
    %cst_87 = arith.constant 9.99999974E-6 : f32
    %231 = vector.broadcast %cst_87 : f32 to vector<16x1xf32>
    %232 = arith.addf %228, %231 : vector<16x1xf32>
    %233 = math.rsqrt %232 : vector<16x1xf32>
    %234 = vector.broadcast %233 : vector<16x1xf32> to vector<16x64xf32>
    %235 = arith.mulf %230, %234 : vector<16x64xf32>
    %236 = vector.broadcast %215 : vector<1x64xf32> to vector<16x64xf32>
    %237 = arith.mulf %235, %236 : vector<16x64xf32>
    %238 = vector.broadcast %217 : vector<1x64xf32> to vector<16x64xf32>
    %239 = arith.addf %237, %238 : vector<16x64xf32>
    %c1 = arith.constant 1 : index
    %c0_88 = arith.constant 0 : index
    %c0_89 = arith.constant 0 : index
    %240 = vector.load %arg3[%c1, %c0_88, %c0_89] : memref<2x64x192xf32, #tpu.memory_space<vmem>>, vector<1x64x192xf32>
    %241 = vector.shape_cast %240 : vector<1x64x192xf32> to vector<64x192xf32>
    %cst_90 = arith.constant dense<0.000000e+00> : vector<16x192xf32>
    %242 = tpu.matmul %239, %241, %cst_90 {dimension_numbers = #tpu.dot_dimension_numbers<[1], [0], [0], [1], [0, 0, 1, 1], [], []>} : vector<16x64xf32>, vector<64x192xf32>, vector<16x192xf32> -> vector<16x192xf32>
    %c1_91 = arith.constant 1 : index
    %c0_92 = arith.constant 0 : index
    %c0_93 = arith.constant 0 : index
    %243 = vector.load %arg4[%c1_91, %c0_92, %c0_93] : memref<2x1x192xf32, #tpu.memory_space<vmem>>, vector<1x1x192xf32>
    %244 = vector.shape_cast %243 : vector<1x1x192xf32> to vector<1x192xf32>
    %245 = vector.broadcast %244 : vector<1x192xf32> to vector<16x192xf32>
    %246 = arith.addf %242, %245 : vector<16x192xf32>
    %247 = vector.extract_strided_slice %246 {offsets = [0, 0], sizes = [16, 64], strides = [1, 1]} : vector<16x192xf32> to vector<16x64xf32>
    %cst_94 = arith.constant 2.500000e-01 : f32
    %248 = vector.broadcast %cst_94 : f32 to vector<16x64xf32>
    %249 = arith.mulf %247, %248 : vector<16x64xf32>
    %250 = vector.extract_strided_slice %246 {offsets = [0, 64], sizes = [16, 64], strides = [1, 1]} : vector<16x192xf32> to vector<16x64xf32>
    %251 = vector.extract_strided_slice %246 {offsets = [0, 128], sizes = [16, 64], strides = [1, 1]} : vector<16x192xf32> to vector<16x64xf32>
    %252 = vector.extract_strided_slice %249 {offsets = [0, 0], sizes = [8, 64], strides = [1, 1]} : vector<16x64xf32> to vector<8x64xf32>
    %253 = vector.extract_strided_slice %250 {offsets = [0, 0], sizes = [8, 64], strides = [1, 1]} : vector<16x64xf32> to vector<8x64xf32>
    %254 = vector.extract_strided_slice %251 {offsets = [0, 0], sizes = [8, 64], strides = [1, 1]} : vector<16x64xf32> to vector<8x64xf32>
    %255 = vector.extract_strided_slice %1 {offsets = [0, 0], sizes = [1, 8], strides = [1, 1]} : vector<2x8xf32> to vector<1x8xf32>
    %256 = vector.broadcast %255 : vector<1x8xf32> to vector<8x8xf32>
    %257 = arith.addf %7, %256 : vector<8x8xf32>
    %258 = vector.extract_strided_slice %252 {offsets = [0, 0], sizes = [8, 16], strides = [1, 1]} : vector<8x64xf32> to vector<8x16xf32>
    %259 = vector.extract_strided_slice %253 {offsets = [0, 0], sizes = [8, 16], strides = [1, 1]} : vector<8x64xf32> to vector<8x16xf32>
    %cst_95 = arith.constant dense<0.000000e+00> : vector<8x8xf32>
    %260 = tpu.matmul %258, %259, %cst_95 {dimension_numbers = #tpu.dot_dimension_numbers<[1], [1], [0], [0], [0, 0, 1, 0], [], []>} : vector<8x16xf32>, vector<8x16xf32>, vector<8x8xf32> -> vector<8x8xf32>
    %261 = arith.addf %260, %257 : vector<8x8xf32>
    %cst_96 = arith.constant dense<0xFF800000> : vector<8xf32>
    %262 = vector.multi_reduction <maximumf>, %261, %cst_96 [1] : vector<8x8xf32> to vector<8xf32>
    %263 = vector.shape_cast %262 : vector<8xf32> to vector<8x1xf32>
    %264 = vector.broadcast %263 : vector<8x1xf32> to vector<8x8xf32>
    %265 = arith.subf %261, %264 : vector<8x8xf32>
    %266 = math.exp %265 : vector<8x8xf32>
    %cst_97 = arith.constant dense<0.000000e+00> : vector<8xf32>
    %267 = vector.multi_reduction <add>, %266, %cst_97 [1] : vector<8x8xf32> to vector<8xf32>
    %268 = vector.shape_cast %267 : vector<8xf32> to vector<8x1xf32>
    %269 = tpu.reciprocal %268 {approx = true} : vector<8x1xf32> -> vector<8x1xf32>
    %270 = vector.broadcast %269 : vector<8x1xf32> to vector<8x8xf32>
    %271 = arith.mulf %266, %270 : vector<8x8xf32>
    %272 = vector.extract_strided_slice %254 {offsets = [0, 0], sizes = [8, 16], strides = [1, 1]} : vector<8x64xf32> to vector<8x16xf32>
    %cst_98 = arith.constant dense<0.000000e+00> : vector<8x16xf32>
    %273 = tpu.matmul %271, %272, %cst_98 {dimension_numbers = #tpu.dot_dimension_numbers<[1], [0], [0], [1], [0, 0, 1, 1], [], []>} : vector<8x8xf32>, vector<8x16xf32>, vector<8x16xf32> -> vector<8x16xf32>
    %274 = vector.extract_strided_slice %252 {offsets = [0, 16], sizes = [8, 16], strides = [1, 1]} : vector<8x64xf32> to vector<8x16xf32>
    %275 = vector.extract_strided_slice %253 {offsets = [0, 16], sizes = [8, 16], strides = [1, 1]} : vector<8x64xf32> to vector<8x16xf32>
    %cst_99 = arith.constant dense<0.000000e+00> : vector<8x8xf32>
    %276 = tpu.matmul %274, %275, %cst_99 {dimension_numbers = #tpu.dot_dimension_numbers<[1], [1], [0], [0], [0, 0, 1, 0], [], []>} : vector<8x16xf32>, vector<8x16xf32>, vector<8x8xf32> -> vector<8x8xf32>
    %277 = arith.addf %276, %257 : vector<8x8xf32>
    %cst_100 = arith.constant dense<0xFF800000> : vector<8xf32>
    %278 = vector.multi_reduction <maximumf>, %277, %cst_100 [1] : vector<8x8xf32> to vector<8xf32>
    %279 = vector.shape_cast %278 : vector<8xf32> to vector<8x1xf32>
    %280 = vector.broadcast %279 : vector<8x1xf32> to vector<8x8xf32>
    %281 = arith.subf %277, %280 : vector<8x8xf32>
    %282 = math.exp %281 : vector<8x8xf32>
    %cst_101 = arith.constant dense<0.000000e+00> : vector<8xf32>
    %283 = vector.multi_reduction <add>, %282, %cst_101 [1] : vector<8x8xf32> to vector<8xf32>
    %284 = vector.shape_cast %283 : vector<8xf32> to vector<8x1xf32>
    %285 = tpu.reciprocal %284 {approx = true} : vector<8x1xf32> -> vector<8x1xf32>
    %286 = vector.broadcast %285 : vector<8x1xf32> to vector<8x8xf32>
    %287 = arith.mulf %282, %286 : vector<8x8xf32>
    %288 = vector.extract_strided_slice %254 {offsets = [0, 16], sizes = [8, 16], strides = [1, 1]} : vector<8x64xf32> to vector<8x16xf32>
    %cst_102 = arith.constant dense<0.000000e+00> : vector<8x16xf32>
    %289 = tpu.matmul %287, %288, %cst_102 {dimension_numbers = #tpu.dot_dimension_numbers<[1], [0], [0], [1], [0, 0, 1, 1], [], []>} : vector<8x8xf32>, vector<8x16xf32>, vector<8x16xf32> -> vector<8x16xf32>
    %290 = vector.extract_strided_slice %252 {offsets = [0, 32], sizes = [8, 16], strides = [1, 1]} : vector<8x64xf32> to vector<8x16xf32>
    %291 = vector.extract_strided_slice %253 {offsets = [0, 32], sizes = [8, 16], strides = [1, 1]} : vector<8x64xf32> to vector<8x16xf32>
    %cst_103 = arith.constant dense<0.000000e+00> : vector<8x8xf32>
    %292 = tpu.matmul %290, %291, %cst_103 {dimension_numbers = #tpu.dot_dimension_numbers<[1], [1], [0], [0], [0, 0, 1, 0], [], []>} : vector<8x16xf32>, vector<8x16xf32>, vector<8x8xf32> -> vector<8x8xf32>
    %293 = arith.addf %292, %257 : vector<8x8xf32>
    %cst_104 = arith.constant dense<0xFF800000> : vector<8xf32>
    %294 = vector.multi_reduction <maximumf>, %293, %cst_104 [1] : vector<8x8xf32> to vector<8xf32>
    %295 = vector.shape_cast %294 : vector<8xf32> to vector<8x1xf32>
    %296 = vector.broadcast %295 : vector<8x1xf32> to vector<8x8xf32>
    %297 = arith.subf %293, %296 : vector<8x8xf32>
    %298 = math.exp %297 : vector<8x8xf32>
    %cst_105 = arith.constant dense<0.000000e+00> : vector<8xf32>
    %299 = vector.multi_reduction <add>, %298, %cst_105 [1] : vector<8x8xf32> to vector<8xf32>
    %300 = vector.shape_cast %299 : vector<8xf32> to vector<8x1xf32>
    %301 = tpu.reciprocal %300 {approx = true} : vector<8x1xf32> -> vector<8x1xf32>
    %302 = vector.broadcast %301 : vector<8x1xf32> to vector<8x8xf32>
    %303 = arith.mulf %298, %302 : vector<8x8xf32>
    %304 = vector.extract_strided_slice %254 {offsets = [0, 32], sizes = [8, 16], strides = [1, 1]} : vector<8x64xf32> to vector<8x16xf32>
    %cst_106 = arith.constant dense<0.000000e+00> : vector<8x16xf32>
    %305 = tpu.matmul %303, %304, %cst_106 {dimension_numbers = #tpu.dot_dimension_numbers<[1], [0], [0], [1], [0, 0, 1, 1], [], []>} : vector<8x8xf32>, vector<8x16xf32>, vector<8x16xf32> -> vector<8x16xf32>
    %306 = vector.extract_strided_slice %252 {offsets = [0, 48], sizes = [8, 16], strides = [1, 1]} : vector<8x64xf32> to vector<8x16xf32>
    %307 = vector.extract_strided_slice %253 {offsets = [0, 48], sizes = [8, 16], strides = [1, 1]} : vector<8x64xf32> to vector<8x16xf32>
    %cst_107 = arith.constant dense<0.000000e+00> : vector<8x8xf32>
    %308 = tpu.matmul %306, %307, %cst_107 {dimension_numbers = #tpu.dot_dimension_numbers<[1], [1], [0], [0], [0, 0, 1, 0], [], []>} : vector<8x16xf32>, vector<8x16xf32>, vector<8x8xf32> -> vector<8x8xf32>
    %309 = arith.addf %308, %257 : vector<8x8xf32>
    %cst_108 = arith.constant dense<0xFF800000> : vector<8xf32>
    %310 = vector.multi_reduction <maximumf>, %309, %cst_108 [1] : vector<8x8xf32> to vector<8xf32>
    %311 = vector.shape_cast %310 : vector<8xf32> to vector<8x1xf32>
    %312 = vector.broadcast %311 : vector<8x1xf32> to vector<8x8xf32>
    %313 = arith.subf %309, %312 : vector<8x8xf32>
    %314 = math.exp %313 : vector<8x8xf32>
    %cst_109 = arith.constant dense<0.000000e+00> : vector<8xf32>
    %315 = vector.multi_reduction <add>, %314, %cst_109 [1] : vector<8x8xf32> to vector<8xf32>
    %316 = vector.shape_cast %315 : vector<8xf32> to vector<8x1xf32>
    %317 = tpu.reciprocal %316 {approx = true} : vector<8x1xf32> -> vector<8x1xf32>
    %318 = vector.broadcast %317 : vector<8x1xf32> to vector<8x8xf32>
    %319 = arith.mulf %314, %318 : vector<8x8xf32>
    %320 = vector.extract_strided_slice %254 {offsets = [0, 48], sizes = [8, 16], strides = [1, 1]} : vector<8x64xf32> to vector<8x16xf32>
    %cst_110 = arith.constant dense<0.000000e+00> : vector<8x16xf32>
    %321 = tpu.matmul %319, %320, %cst_110 {dimension_numbers = #tpu.dot_dimension_numbers<[1], [0], [0], [1], [0, 0, 1, 1], [], []>} : vector<8x8xf32>, vector<8x16xf32>, vector<8x16xf32> -> vector<8x16xf32>
    %322 = tpu.concatenate %273, %289, %305, %321 in 1 : vector<8x16xf32>, vector<8x16xf32>, vector<8x16xf32>, vector<8x16xf32> -> vector<8x64xf32>
    %323 = vector.extract_strided_slice %249 {offsets = [8, 0], sizes = [8, 64], strides = [1, 1]} : vector<16x64xf32> to vector<8x64xf32>
    %324 = vector.extract_strided_slice %250 {offsets = [8, 0], sizes = [8, 64], strides = [1, 1]} : vector<16x64xf32> to vector<8x64xf32>
    %325 = vector.extract_strided_slice %251 {offsets = [8, 0], sizes = [8, 64], strides = [1, 1]} : vector<16x64xf32> to vector<8x64xf32>
    %326 = vector.extract_strided_slice %1 {offsets = [1, 0], sizes = [1, 8], strides = [1, 1]} : vector<2x8xf32> to vector<1x8xf32>
    %327 = vector.broadcast %326 : vector<1x8xf32> to vector<8x8xf32>
    %328 = arith.addf %7, %327 : vector<8x8xf32>
    %329 = vector.extract_strided_slice %323 {offsets = [0, 0], sizes = [8, 16], strides = [1, 1]} : vector<8x64xf32> to vector<8x16xf32>
    %330 = vector.extract_strided_slice %324 {offsets = [0, 0], sizes = [8, 16], strides = [1, 1]} : vector<8x64xf32> to vector<8x16xf32>
    %cst_111 = arith.constant dense<0.000000e+00> : vector<8x8xf32>
    %331 = tpu.matmul %329, %330, %cst_111 {dimension_numbers = #tpu.dot_dimension_numbers<[1], [1], [0], [0], [0, 0, 1, 0], [], []>} : vector<8x16xf32>, vector<8x16xf32>, vector<8x8xf32> -> vector<8x8xf32>
    %332 = arith.addf %331, %328 : vector<8x8xf32>
    %cst_112 = arith.constant dense<0xFF800000> : vector<8xf32>
    %333 = vector.multi_reduction <maximumf>, %332, %cst_112 [1] : vector<8x8xf32> to vector<8xf32>
    %334 = vector.shape_cast %333 : vector<8xf32> to vector<8x1xf32>
    %335 = vector.broadcast %334 : vector<8x1xf32> to vector<8x8xf32>
    %336 = arith.subf %332, %335 : vector<8x8xf32>
    %337 = math.exp %336 : vector<8x8xf32>
    %cst_113 = arith.constant dense<0.000000e+00> : vector<8xf32>
    %338 = vector.multi_reduction <add>, %337, %cst_113 [1] : vector<8x8xf32> to vector<8xf32>
    %339 = vector.shape_cast %338 : vector<8xf32> to vector<8x1xf32>
    %340 = tpu.reciprocal %339 {approx = true} : vector<8x1xf32> -> vector<8x1xf32>
    %341 = vector.broadcast %340 : vector<8x1xf32> to vector<8x8xf32>
    %342 = arith.mulf %337, %341 : vector<8x8xf32>
    %343 = vector.extract_strided_slice %325 {offsets = [0, 0], sizes = [8, 16], strides = [1, 1]} : vector<8x64xf32> to vector<8x16xf32>
    %cst_114 = arith.constant dense<0.000000e+00> : vector<8x16xf32>
    %344 = tpu.matmul %342, %343, %cst_114 {dimension_numbers = #tpu.dot_dimension_numbers<[1], [0], [0], [1], [0, 0, 1, 1], [], []>} : vector<8x8xf32>, vector<8x16xf32>, vector<8x16xf32> -> vector<8x16xf32>
    %345 = vector.extract_strided_slice %323 {offsets = [0, 16], sizes = [8, 16], strides = [1, 1]} : vector<8x64xf32> to vector<8x16xf32>
    %346 = vector.extract_strided_slice %324 {offsets = [0, 16], sizes = [8, 16], strides = [1, 1]} : vector<8x64xf32> to vector<8x16xf32>
    %cst_115 = arith.constant dense<0.000000e+00> : vector<8x8xf32>
    %347 = tpu.matmul %345, %346, %cst_115 {dimension_numbers = #tpu.dot_dimension_numbers<[1], [1], [0], [0], [0, 0, 1, 0], [], []>} : vector<8x16xf32>, vector<8x16xf32>, vector<8x8xf32> -> vector<8x8xf32>
    %348 = arith.addf %347, %328 : vector<8x8xf32>
    %cst_116 = arith.constant dense<0xFF800000> : vector<8xf32>
    %349 = vector.multi_reduction <maximumf>, %348, %cst_116 [1] : vector<8x8xf32> to vector<8xf32>
    %350 = vector.shape_cast %349 : vector<8xf32> to vector<8x1xf32>
    %351 = vector.broadcast %350 : vector<8x1xf32> to vector<8x8xf32>
    %352 = arith.subf %348, %351 : vector<8x8xf32>
    %353 = math.exp %352 : vector<8x8xf32>
    %cst_117 = arith.constant dense<0.000000e+00> : vector<8xf32>
    %354 = vector.multi_reduction <add>, %353, %cst_117 [1] : vector<8x8xf32> to vector<8xf32>
    %355 = vector.shape_cast %354 : vector<8xf32> to vector<8x1xf32>
    %356 = tpu.reciprocal %355 {approx = true} : vector<8x1xf32> -> vector<8x1xf32>
    %357 = vector.broadcast %356 : vector<8x1xf32> to vector<8x8xf32>
    %358 = arith.mulf %353, %357 : vector<8x8xf32>
    %359 = vector.extract_strided_slice %325 {offsets = [0, 16], sizes = [8, 16], strides = [1, 1]} : vector<8x64xf32> to vector<8x16xf32>
    %cst_118 = arith.constant dense<0.000000e+00> : vector<8x16xf32>
    %360 = tpu.matmul %358, %359, %cst_118 {dimension_numbers = #tpu.dot_dimension_numbers<[1], [0], [0], [1], [0, 0, 1, 1], [], []>} : vector<8x8xf32>, vector<8x16xf32>, vector<8x16xf32> -> vector<8x16xf32>
    %361 = vector.extract_strided_slice %323 {offsets = [0, 32], sizes = [8, 16], strides = [1, 1]} : vector<8x64xf32> to vector<8x16xf32>
    %362 = vector.extract_strided_slice %324 {offsets = [0, 32], sizes = [8, 16], strides = [1, 1]} : vector<8x64xf32> to vector<8x16xf32>
    %cst_119 = arith.constant dense<0.000000e+00> : vector<8x8xf32>
    %363 = tpu.matmul %361, %362, %cst_119 {dimension_numbers = #tpu.dot_dimension_numbers<[1], [1], [0], [0], [0, 0, 1, 0], [], []>} : vector<8x16xf32>, vector<8x16xf32>, vector<8x8xf32> -> vector<8x8xf32>
    %364 = arith.addf %363, %328 : vector<8x8xf32>
    %cst_120 = arith.constant dense<0xFF800000> : vector<8xf32>
    %365 = vector.multi_reduction <maximumf>, %364, %cst_120 [1] : vector<8x8xf32> to vector<8xf32>
    %366 = vector.shape_cast %365 : vector<8xf32> to vector<8x1xf32>
    %367 = vector.broadcast %366 : vector<8x1xf32> to vector<8x8xf32>
    %368 = arith.subf %364, %367 : vector<8x8xf32>
    %369 = math.exp %368 : vector<8x8xf32>
    %cst_121 = arith.constant dense<0.000000e+00> : vector<8xf32>
    %370 = vector.multi_reduction <add>, %369, %cst_121 [1] : vector<8x8xf32> to vector<8xf32>
    %371 = vector.shape_cast %370 : vector<8xf32> to vector<8x1xf32>
    %372 = tpu.reciprocal %371 {approx = true} : vector<8x1xf32> -> vector<8x1xf32>
    %373 = vector.broadcast %372 : vector<8x1xf32> to vector<8x8xf32>
    %374 = arith.mulf %369, %373 : vector<8x8xf32>
    %375 = vector.extract_strided_slice %325 {offsets = [0, 32], sizes = [8, 16], strides = [1, 1]} : vector<8x64xf32> to vector<8x16xf32>
    %cst_122 = arith.constant dense<0.000000e+00> : vector<8x16xf32>
    %376 = tpu.matmul %374, %375, %cst_122 {dimension_numbers = #tpu.dot_dimension_numbers<[1], [0], [0], [1], [0, 0, 1, 1], [], []>} : vector<8x8xf32>, vector<8x16xf32>, vector<8x16xf32> -> vector<8x16xf32>
    %377 = vector.extract_strided_slice %323 {offsets = [0, 48], sizes = [8, 16], strides = [1, 1]} : vector<8x64xf32> to vector<8x16xf32>
    %378 = vector.extract_strided_slice %324 {offsets = [0, 48], sizes = [8, 16], strides = [1, 1]} : vector<8x64xf32> to vector<8x16xf32>
    %cst_123 = arith.constant dense<0.000000e+00> : vector<8x8xf32>
    %379 = tpu.matmul %377, %378, %cst_123 {dimension_numbers = #tpu.dot_dimension_numbers<[1], [1], [0], [0], [0, 0, 1, 0], [], []>} : vector<8x16xf32>, vector<8x16xf32>, vector<8x8xf32> -> vector<8x8xf32>
    %380 = arith.addf %379, %328 : vector<8x8xf32>
    %cst_124 = arith.constant dense<0xFF800000> : vector<8xf32>
    %381 = vector.multi_reduction <maximumf>, %380, %cst_124 [1] : vector<8x8xf32> to vector<8xf32>
    %382 = vector.shape_cast %381 : vector<8xf32> to vector<8x1xf32>
    %383 = vector.broadcast %382 : vector<8x1xf32> to vector<8x8xf32>
    %384 = arith.subf %380, %383 : vector<8x8xf32>
    %385 = math.exp %384 : vector<8x8xf32>
    %cst_125 = arith.constant dense<0.000000e+00> : vector<8xf32>
    %386 = vector.multi_reduction <add>, %385, %cst_125 [1] : vector<8x8xf32> to vector<8xf32>
    %387 = vector.shape_cast %386 : vector<8xf32> to vector<8x1xf32>
    %388 = tpu.reciprocal %387 {approx = true} : vector<8x1xf32> -> vector<8x1xf32>
    %389 = vector.broadcast %388 : vector<8x1xf32> to vector<8x8xf32>
    %390 = arith.mulf %385, %389 : vector<8x8xf32>
    %391 = vector.extract_strided_slice %325 {offsets = [0, 48], sizes = [8, 16], strides = [1, 1]} : vector<8x64xf32> to vector<8x16xf32>
    %cst_126 = arith.constant dense<0.000000e+00> : vector<8x16xf32>
    %392 = tpu.matmul %390, %391, %cst_126 {dimension_numbers = #tpu.dot_dimension_numbers<[1], [0], [0], [1], [0, 0, 1, 1], [], []>} : vector<8x8xf32>, vector<8x16xf32>, vector<8x16xf32> -> vector<8x16xf32>
    %393 = tpu.concatenate %344, %360, %376, %392 in 1 : vector<8x16xf32>, vector<8x16xf32>, vector<8x16xf32>, vector<8x16xf32> -> vector<8x64xf32>
    %394 = tpu.concatenate %322, %393 in 0 : vector<8x64xf32>, vector<8x64xf32> -> vector<16x64xf32>
    %c1_127 = arith.constant 1 : index
    %c0_128 = arith.constant 0 : index
    %c0_129 = arith.constant 0 : index
    %395 = vector.load %arg5[%c1_127, %c0_128, %c0_129] : memref<2x64x64xf32, #tpu.memory_space<vmem>>, vector<1x64x64xf32>
    %396 = vector.shape_cast %395 : vector<1x64x64xf32> to vector<64x64xf32>
    %cst_130 = arith.constant dense<0.000000e+00> : vector<16x64xf32>
    %397 = tpu.matmul %394, %396, %cst_130 {dimension_numbers = #tpu.dot_dimension_numbers<[1], [0], [0], [1], [0, 0, 1, 1], [], []>} : vector<16x64xf32>, vector<64x64xf32>, vector<16x64xf32> -> vector<16x64xf32>
    %c1_131 = arith.constant 1 : index
    %c0_132 = arith.constant 0 : index
    %c0_133 = arith.constant 0 : index
    %398 = vector.load %arg6[%c1_131, %c0_132, %c0_133] : memref<2x1x64xf32, #tpu.memory_space<vmem>>, vector<1x1x64xf32>
    %399 = vector.shape_cast %398 : vector<1x1x64xf32> to vector<1x64xf32>
    %400 = vector.broadcast %399 : vector<1x64xf32> to vector<16x64xf32>
    %401 = arith.addf %397, %400 : vector<16x64xf32>
    %402 = arith.addf %239, %401 : vector<16x64xf32>
    %c1_134 = arith.constant 1 : index
    %c0_135 = arith.constant 0 : index
    %c0_136 = arith.constant 0 : index
    %403 = vector.load %arg7[%c1_134, %c0_135, %c0_136] : memref<2x1x64xf32, #tpu.memory_space<vmem>>, vector<1x1x64xf32>
    %404 = vector.shape_cast %403 : vector<1x1x64xf32> to vector<1x64xf32>
    %c1_137 = arith.constant 1 : index
    %c0_138 = arith.constant 0 : index
    %c0_139 = arith.constant 0 : index
    %405 = vector.load %arg8[%c1_137, %c0_138, %c0_139] : memref<2x1x64xf32, #tpu.memory_space<vmem>>, vector<1x1x64xf32>
    %406 = vector.shape_cast %405 : vector<1x1x64xf32> to vector<1x64xf32>
    %cst_140 = arith.constant dense<0.000000e+00> : vector<16xf32>
    %407 = vector.multi_reduction <add>, %402, %cst_140 [1] : vector<16x64xf32> to vector<16xf32>
    %408 = vector.shape_cast %407 : vector<16xf32> to vector<16x1xf32>
    %cst_141 = arith.constant 6.400000e+01 : f32
    %409 = vector.broadcast %cst_141 : f32 to vector<16x1xf32>
    %410 = arith.divf %408, %409 : vector<16x1xf32>
    %411 = vector.broadcast %410 : vector<16x1xf32> to vector<16x64xf32>
    %412 = arith.subf %402, %411 : vector<16x64xf32>
    %413 = arith.mulf %412, %412 : vector<16x64xf32>
    %cst_142 = arith.constant dense<0.000000e+00> : vector<16xf32>
    %414 = vector.multi_reduction <add>, %413, %cst_142 [1] : vector<16x64xf32> to vector<16xf32>
    %415 = vector.shape_cast %414 : vector<16xf32> to vector<16x1xf32>
    %cst_143 = arith.constant 6.400000e+01 : f32
    %416 = vector.broadcast %cst_143 : f32 to vector<16x1xf32>
    %417 = arith.divf %415, %416 : vector<16x1xf32>
    %418 = vector.broadcast %410 : vector<16x1xf32> to vector<16x64xf32>
    %419 = arith.subf %402, %418 : vector<16x64xf32>
    %cst_144 = arith.constant 9.99999974E-6 : f32
    %420 = vector.broadcast %cst_144 : f32 to vector<16x1xf32>
    %421 = arith.addf %417, %420 : vector<16x1xf32>
    %422 = math.rsqrt %421 : vector<16x1xf32>
    %423 = vector.broadcast %422 : vector<16x1xf32> to vector<16x64xf32>
    %424 = arith.mulf %419, %423 : vector<16x64xf32>
    %425 = vector.broadcast %404 : vector<1x64xf32> to vector<16x64xf32>
    %426 = arith.mulf %424, %425 : vector<16x64xf32>
    %427 = vector.broadcast %406 : vector<1x64xf32> to vector<16x64xf32>
    %428 = arith.addf %426, %427 : vector<16x64xf32>
    %c1_145 = arith.constant 1 : index
    %c0_146 = arith.constant 0 : index
    %c0_147 = arith.constant 0 : index
    %429 = vector.load %arg9[%c1_145, %c0_146, %c0_147] : memref<2x64x128xf32, #tpu.memory_space<vmem>>, vector<1x64x128xf32>
    %430 = vector.shape_cast %429 : vector<1x64x128xf32> to vector<64x128xf32>
    %cst_148 = arith.constant dense<0.000000e+00> : vector<16x128xf32>
    %431 = tpu.matmul %428, %430, %cst_148 {dimension_numbers = #tpu.dot_dimension_numbers<[1], [0], [0], [1], [0, 0, 1, 1], [], []>} : vector<16x64xf32>, vector<64x128xf32>, vector<16x128xf32> -> vector<16x128xf32>
    %c1_149 = arith.constant 1 : index
    %c0_150 = arith.constant 0 : index
    %c0_151 = arith.constant 0 : index
    %432 = vector.load %arg10[%c1_149, %c0_150, %c0_151] : memref<2x1x128xf32, #tpu.memory_space<vmem>>, vector<1x1x128xf32>
    %433 = vector.shape_cast %432 : vector<1x1x128xf32> to vector<1x128xf32>
    %434 = vector.broadcast %433 : vector<1x128xf32> to vector<16x128xf32>
    %435 = arith.addf %431, %434 : vector<16x128xf32>
    %cst_152 = arith.constant 0.000000e+00 : f32
    %436 = vector.broadcast %cst_152 : f32 to vector<16x128xf32>
    %437 = arith.maximumf %435, %436 : vector<16x128xf32>
    %c1_153 = arith.constant 1 : index
    %c0_154 = arith.constant 0 : index
    %c0_155 = arith.constant 0 : index
    %438 = vector.load %arg11[%c1_153, %c0_154, %c0_155] : memref<2x128x64xf32, #tpu.memory_space<vmem>>, vector<1x128x64xf32>
    %439 = vector.shape_cast %438 : vector<1x128x64xf32> to vector<128x64xf32>
    %cst_156 = arith.constant dense<0.000000e+00> : vector<16x64xf32>
    %440 = tpu.matmul %437, %439, %cst_156 {dimension_numbers = #tpu.dot_dimension_numbers<[1], [0], [0], [1], [0, 0, 1, 1], [], []>} : vector<16x128xf32>, vector<128x64xf32>, vector<16x64xf32> -> vector<16x64xf32>
    %c1_157 = arith.constant 1 : index
    %c0_158 = arith.constant 0 : index
    %c0_159 = arith.constant 0 : index
    %441 = vector.load %arg12[%c1_157, %c0_158, %c0_159] : memref<2x1x64xf32, #tpu.memory_space<vmem>>, vector<1x1x64xf32>
    %442 = vector.shape_cast %441 : vector<1x1x64xf32> to vector<1x64xf32>
    %443 = vector.broadcast %442 : vector<1x64xf32> to vector<16x64xf32>
    %444 = arith.addf %440, %443 : vector<16x64xf32>
    %445 = arith.addf %428, %444 : vector<16x64xf32>
    %c1_160 = arith.constant 1 : index
    %c0_161 = arith.constant 0 : index
    %c0_162 = arith.constant 0 : index
    %446 = vector.load %arg13[%c1_160, %c0_161, %c0_162] : memref<2x1x64xf32, #tpu.memory_space<vmem>>, vector<1x1x64xf32>
    %447 = vector.shape_cast %446 : vector<1x1x64xf32> to vector<1x64xf32>
    %c1_163 = arith.constant 1 : index
    %c0_164 = arith.constant 0 : index
    %c0_165 = arith.constant 0 : index
    %448 = vector.load %arg14[%c1_163, %c0_164, %c0_165] : memref<2x1x64xf32, #tpu.memory_space<vmem>>, vector<1x1x64xf32>
    %449 = vector.shape_cast %448 : vector<1x1x64xf32> to vector<1x64xf32>
    %cst_166 = arith.constant dense<0.000000e+00> : vector<16xf32>
    %450 = vector.multi_reduction <add>, %445, %cst_166 [1] : vector<16x64xf32> to vector<16xf32>
    %451 = vector.shape_cast %450 : vector<16xf32> to vector<16x1xf32>
    %cst_167 = arith.constant 6.400000e+01 : f32
    %452 = vector.broadcast %cst_167 : f32 to vector<16x1xf32>
    %453 = arith.divf %451, %452 : vector<16x1xf32>
    %454 = vector.broadcast %453 : vector<16x1xf32> to vector<16x64xf32>
    %455 = arith.subf %445, %454 : vector<16x64xf32>
    %456 = arith.mulf %455, %455 : vector<16x64xf32>
    %cst_168 = arith.constant dense<0.000000e+00> : vector<16xf32>
    %457 = vector.multi_reduction <add>, %456, %cst_168 [1] : vector<16x64xf32> to vector<16xf32>
    %458 = vector.shape_cast %457 : vector<16xf32> to vector<16x1xf32>
    %cst_169 = arith.constant 6.400000e+01 : f32
    %459 = vector.broadcast %cst_169 : f32 to vector<16x1xf32>
    %460 = arith.divf %458, %459 : vector<16x1xf32>
    %461 = vector.broadcast %453 : vector<16x1xf32> to vector<16x64xf32>
    %462 = arith.subf %445, %461 : vector<16x64xf32>
    %cst_170 = arith.constant 9.99999974E-6 : f32
    %463 = vector.broadcast %cst_170 : f32 to vector<16x1xf32>
    %464 = arith.addf %460, %463 : vector<16x1xf32>
    %465 = math.rsqrt %464 : vector<16x1xf32>
    %466 = vector.broadcast %465 : vector<16x1xf32> to vector<16x64xf32>
    %467 = arith.mulf %462, %466 : vector<16x64xf32>
    %468 = vector.broadcast %447 : vector<1x64xf32> to vector<16x64xf32>
    %469 = arith.mulf %467, %468 : vector<16x64xf32>
    %470 = vector.broadcast %449 : vector<1x64xf32> to vector<16x64xf32>
    %471 = arith.addf %469, %470 : vector<16x64xf32>
    %c0_171 = arith.constant 0 : index
    %c0_172 = arith.constant 0 : index
    %472 = vector.load %arg15[%c0_171, %c0_172] : memref<64x32xf32, #tpu.memory_space<vmem>>, vector<64x32xf32>
    %cst_173 = arith.constant dense<0.000000e+00> : vector<16x32xf32>
    %473 = tpu.matmul %471, %472, %cst_173 {dimension_numbers = #tpu.dot_dimension_numbers<[1], [0], [0], [1], [0, 0, 1, 1], [], []>} : vector<16x64xf32>, vector<64x32xf32>, vector<16x32xf32> -> vector<16x32xf32>
    %c0_174 = arith.constant 0 : index
    %c0_175 = arith.constant 0 : index
    %474 = vector.load %arg16[%c0_174, %c0_175] : memref<1x32xf32, #tpu.memory_space<vmem>>, vector<1x32xf32>
    %475 = vector.broadcast %474 : vector<1x32xf32> to vector<16x32xf32>
    %476 = arith.addf %473, %475 : vector<16x32xf32>
    %c0_176 = arith.constant 0 : index
    %c0_177 = arith.constant 0 : index
    %477 = vector.load %arg17[%c0_176, %c0_177] : memref<16x32xf32, #tpu.memory_space<vmem>>, vector<16x32xf32>
    tpu.vector_store %arg17[%c0_176, %c0_177], %476 {strides = array<i32>} : memref<16x32xf32, #tpu.memory_space<vmem>>, vector<16x32xf32>,
    return
  }
  func.func @transform_0(%arg0: i32) -> (i32, i32) {
    %c0_i32 = arith.constant 0 : i32
    %c0_i32_0 = arith.constant 0 : i32
    %c0_i32_1 = arith.constant 0 : i32
    return %c0_i32, %c0_i32_0 : i32, i32
  }
  func.func @transform_1(%arg0: i32) -> (i32, i32) {
    %c0_i32 = arith.constant 0 : i32
    %c0_i32_0 = arith.constant 0 : i32
    %c0_i32_1 = arith.constant 0 : i32
    return %c0_i32, %c0_i32_0 : i32, i32
  }
  func.func @transform_2(%arg0: i32) -> (i32, i32, i32) {
    %c0_i32 = arith.constant 0 : i32
    %c0_i32_0 = arith.constant 0 : i32
    %c0_i32_1 = arith.constant 0 : i32
    %c0_i32_2 = arith.constant 0 : i32
    return %c0_i32, %c0_i32_0, %c0_i32_1 : i32, i32, i32
  }
  func.func @transform_3(%arg0: i32) -> (i32, i32, i32) {
    %c0_i32 = arith.constant 0 : i32
    %c0_i32_0 = arith.constant 0 : i32
    %c0_i32_1 = arith.constant 0 : i32
    %c0_i32_2 = arith.constant 0 : i32
    return %c0_i32, %c0_i32_0, %c0_i32_1 : i32, i32, i32
  }
  func.func @transform_4(%arg0: i32) -> (i32, i32, i32) {
    %c0_i32 = arith.constant 0 : i32
    %c0_i32_0 = arith.constant 0 : i32
    %c0_i32_1 = arith.constant 0 : i32
    %c0_i32_2 = arith.constant 0 : i32
    return %c0_i32, %c0_i32_0, %c0_i32_1 : i32, i32, i32
  }
  func.func @transform_5(%arg0: i32) -> (i32, i32, i32) {
    %c0_i32 = arith.constant 0 : i32
    %c0_i32_0 = arith.constant 0 : i32
    %c0_i32_1 = arith.constant 0 : i32
    %c0_i32_2 = arith.constant 0 : i32
    return %c0_i32, %c0_i32_0, %c0_i32_1 : i32, i32, i32
  }
  func.func @transform_6(%arg0: i32) -> (i32, i32, i32) {
    %c0_i32 = arith.constant 0 : i32
    %c0_i32_0 = arith.constant 0 : i32
    %c0_i32_1 = arith.constant 0 : i32
    %c0_i32_2 = arith.constant 0 : i32
    return %c0_i32, %c0_i32_0, %c0_i32_1 : i32, i32, i32
  }
  func.func @transform_7(%arg0: i32) -> (i32, i32, i32) {
    %c0_i32 = arith.constant 0 : i32
    %c0_i32_0 = arith.constant 0 : i32
    %c0_i32_1 = arith.constant 0 : i32
    %c0_i32_2 = arith.constant 0 : i32
    return %c0_i32, %c0_i32_0, %c0_i32_1 : i32, i32, i32
  }
  func.func @transform_8(%arg0: i32) -> (i32, i32, i32) {
    %c0_i32 = arith.constant 0 : i32
    %c0_i32_0 = arith.constant 0 : i32
    %c0_i32_1 = arith.constant 0 : i32
    %c0_i32_2 = arith.constant 0 : i32
    return %c0_i32, %c0_i32_0, %c0_i32_1 : i32, i32, i32
  }
  func.func @transform_9(%arg0: i32) -> (i32, i32, i32) {
    %c0_i32 = arith.constant 0 : i32
    %c0_i32_0 = arith.constant 0 : i32
    %c0_i32_1 = arith.constant 0 : i32
    %c0_i32_2 = arith.constant 0 : i32
    return %c0_i32, %c0_i32_0, %c0_i32_1 : i32, i32, i32
  }
  func.func @transform_10(%arg0: i32) -> (i32, i32, i32) {
    %c0_i32 = arith.constant 0 : i32
    %c0_i32_0 = arith.constant 0 : i32
    %c0_i32_1 = arith.constant 0 : i32
    %c0_i32_2 = arith.constant 0 : i32
    return %c0_i32, %c0_i32_0, %c0_i32_1 : i32, i32, i32
  }
  func.func @transform_11(%arg0: i32) -> (i32, i32, i32) {
    %c0_i32 = arith.constant 0 : i32
    %c0_i32_0 = arith.constant 0 : i32
    %c0_i32_1 = arith.constant 0 : i32
    %c0_i32_2 = arith.constant 0 : i32
    return %c0_i32, %c0_i32_0, %c0_i32_1 : i32, i32, i32
  }
  func.func @transform_12(%arg0: i32) -> (i32, i32, i32) {
    %c0_i32 = arith.constant 0 : i32
    %c0_i32_0 = arith.constant 0 : i32
    %c0_i32_1 = arith.constant 0 : i32
    %c0_i32_2 = arith.constant 0 : i32
    return %c0_i32, %c0_i32_0, %c0_i32_1 : i32, i32, i32
  }
  func.func @transform_13(%arg0: i32) -> (i32, i32, i32) {
    %c0_i32 = arith.constant 0 : i32
    %c0_i32_0 = arith.constant 0 : i32
    %c0_i32_1 = arith.constant 0 : i32
    %c0_i32_2 = arith.constant 0 : i32
    return %c0_i32, %c0_i32_0, %c0_i32_1 : i32, i32, i32
  }
  func.func @transform_14(%arg0: i32) -> (i32, i32) {
    %c0_i32 = arith.constant 0 : i32
    %c0_i32_0 = arith.constant 0 : i32
    %c0_i32_1 = arith.constant 0 : i32
    return %c0_i32, %c0_i32_0 : i32, i32
  }
  func.func @transform_15(%arg0: i32) -> (i32, i32) {
    %c0_i32 = arith.constant 0 : i32
    %c0_i32_0 = arith.constant 0 : i32
    %c0_i32_1 = arith.constant 0 : i32
    return %c0_i32, %c0_i32_0 : i32, i32
  }
  func.func @transform_16(%arg0: i32) -> (i32, i32) {
    %c0_i32 = arith.constant 0 : i32
    %c0_i32_0 = arith.constant 0 : i32
    %c0_i32_1 = arith.constant 0 : i32
    return %c0_i32, %c0_i32_0 : i32, i32
  }
}

</mosaic_0001>

<bundles_post_ra>
// kernel: transformer_forward.1
= control target key start
LH: loop header
LB: loop body
LE: loop exit
PB: predicated region body
PF: predicated region fallthrough
CT: control target
= control target key end

     0   :  { %s5676_s0 = inlined_call_operand.vmem [shape: f32[16,64], index: 0, kind: input, shape index: {}]   ;;  %s5677_s1 = inlined_call_operand.vmem [shape: f32[2,8], index: 1, kind: input, shape index: {}]   ;;  %s5678_s2 = inlined_call_operand.vmem [shape: f32[2,64,192], index: 2, kind: input, shape index: {}]   ;;  %s5679_s3 = inlined_call_operand.vmem [shape: f32[2,1,192], index: 3, kind: input, shape index: {}]   ;;  %s5680_s4 = inlined_call_operand.vmem [shape: f32[2,64,64], index: 4, kind: input, shape index: {}]   ;;  %s5681_s5 = inlined_call_operand.vmem [shape: f32[2,1,64], index: 5, kind: input, shape index: {}]   ;;  %s5682_s6 = inlined_call_operand.vmem [shape: f32[2,1,64], index: 6, kind: input, shape index: {}]   ;;  %s5683_s7 = inlined_call_operand.vmem [shape: f32[2,1,64], index: 7, kind: input, shape index: {}]   ;;  %s5684_s8 = inlined_call_operand.vmem [shape: f32[2,64,128], index: 8, kind: input, shape index: {}]   ;;  %s5685_s9 = inlined_call_operand.vmem [shape: f32[2,1,128], index: 9, kind: input, shape index: {}]   ;;  %s5686_s10 = inlined_call_operand.vmem [shape: f32[2,128,64], index: 10, kind: input, shape index: {}]   ;;  %s5687_s11 = inlined_call_operand.vmem [shape: f32[2,1,64], index: 11, kind: input, shape index: {}]   ;;  %s5688_s12 = inlined_call_operand.vmem [shape: f32[2,1,64], index: 12, kind: input, shape index: {}]   ;;  %s5689_s13 = inlined_call_operand.vmem [shape: f32[2,1,64], index: 13, kind: input, shape index: {}]   ;;  %s5690_s14 = inlined_call_operand.vmem [shape: f32[64,32], index: 14, kind: input, shape index: {}]   ;;  %s5691_s15 = inlined_call_operand.vmem [shape: f32[1,32], index: 15, kind: input, shape index: {}]   ;;  %s5692_s16 = inlined_call_operand.hbm [shape: f32[16,32], index: 16, kind: output, shape index: {}]  }
   0x1   :  { %5696 = sst [smem:[#allocation5_spill]] %s5676_s0 }
   0x2   :  { %v64_v0 = vld [vmem:[%s5678_s2 + $0x8] sm:$0xff]  ;;  %v66_v1 = vld [vmem:[%s5678_s2 + $0x18] sm:$0xff]  ;;  %v63_v2 = vld [vmem:[%s5678_s2] sm:$0xff]  ;;  %v4791_v7 = vmov 0.0  }
   0x3   :  { %v4499_v3 = vpack.c.bf16 %v66_v1, %v64_v0  ;;  %v65_v4 = vld [vmem:[%s5678_s2 + $0x10] sm:$0xff]  ;;  %v68_v5 = vld [vmem:[%s5678_s2 + $0x28] sm:$0xff]  ;;  %v70_v6 = vld [vmem:[%s5678_s2 + $0x38] sm:$0xff]  ;;  %162 = vmatprep.mubr.f32.mxu0 %v4791_v7  ;;  %4174 = vmatprep.subr.mxu1 %v4791_v7 }
   0x4   :  { %v4501_v8 = vpack.c.bf16 %v65_v4, %v63_v2  ;;  %v4503_v9 = vpack.c.bf16 %v70_v6, %v68_v5  ;;  %v67_v10 = vld [vmem:[%s5678_s2 + $0x20] sm:$0xff]  ;;  %v69_v11 = vld [vmem:[%s5678_s2 + $0x30] sm:$0xff]  ;;  %v72_v12 = vld [vmem:[%s5678_s2 + $0x48] sm:$0xff] }
   0x5   :  { %4500 = vmatprep.subr.bf16.mxu0 %v4499_v3  ;;  %v74_v13 = vld [vmem:[%s5678_s2 + $0x58] sm:$0xff]  ;;  %v4505_v14 = vpack.c.bf16 %v69_v11, %v67_v10  ;;  %v71_v16 = vld [vmem:[%s5678_s2 + $0x40] sm:$0xff]  ;;  %v73_v17 = vld [vmem:[%s5678_s2 + $0x50] sm:$0xff] }
   0x6   :  { %4502 = vmatpush1.bf16.msra.mxu0 %v4501_v8  ;;  %v4507_v15 = vpack.c.bf16 %v74_v13, %v72_v12  ;;  %v76_v18 = vld [vmem:[%s5678_s2 + $0x68] sm:$0xff]  ;;  %v78_v19 = vld [vmem:[%s5678_s2 + $0x78] sm:$0xff] }
   0x7   :  { %4504 = vmatprep.subr.bf16.mxu0 %v4503_v9 }
   0x8   :  { %21 = vsyncpa [#allocation3], 0  ;;  %v4509_v20 = vpack.c.bf16 %v73_v17, %v71_v16  ;;  %v4511_v21 = vpack.c.bf16 %v78_v19, %v76_v18  ;;  %v75_v22 = vld [vmem:[%s5678_s2 + $0x60] sm:$0xff]  ;;  %v77_v23 = vld [vmem:[%s5678_s2 + $0x70] sm:$0xff]  ;;  %s5697_s25 = sld [smem:[#allocation5_spill]]  ;;  %vm91_vm0 = vcmask 523264   ;;  %v57_v26 = vlaneseq }
   0x9   :  { %v4513_v24 = vpack.c.bf16 %v77_v23, %v75_v22  ;;  %v56_v30 = vld [vmem:[%s5677_s1] sm:$0x3]  ;;  %vm4792_vm2 = vmmov 0   ;;  %s5694_s1 = smov 48   ;;  %s4794_s30 = smov 64   ;;  %vm185_vm3 = vcmask 130048  }
   0xa   :  { %4506 = vmatpush1.bf16.msra.mxu0 %v4505_v14  ;;  %v58_v27 = vshrl.u32 %v57_v26, 7  ;;  %v60_v28 = vand.u32 127, %v57_v26  ;;  %4176 = vmatprep.mubr.msk.f32.mxu1 %vm4792_vm2, %v4791_v7  ;;  %v79_v35 = vld [vmem:[%s5679_s3] sm:$0x3]  ;;  %vm261_vm4 = vcmask 64512   ;;  %s4795_s0 = smov 112  }
   0xb   :  { %4508 = vmatprep.subr.bf16.mxu0 %v4507_v15  ;;  %s4796_s17 = smov 96   ;;  %s4797_s18 = smov 32   ;;  %vm855_vm5 = vcmask 261120   ;;  %vm857_vm6 = vcmask 392192  }
   0xc   :  { %vm61_vm1 = vcmp.gt.s32.totalorder %v60_v28, %v58_v27  ;;  %v4947_v29 = vsub.s32 1, %v58_v27  ;;  %v4958_v34 = vsub.s32 0, %v58_v27  ;;  %s4798_s19 = smov 80   ;;  %s4799_s20 = smov 16  }
   0xd   :  { %v62_v32 = vsel %vm61_vm1, -1e+30, %v4791_v7 }
   0xe   :  { %4510 = vmatpush1.bf16.msra.mxu0 %v4509_v20  ;;  %v4941_v25 = vld [vmem:[%s5697_s25] sm:$0xff]  ;;  %v862_v31 = vrot.slane %v56_v30, %v4947_v29  ;;  %v4964_v36 = vrot.slane %v79_v35, %v4958_v34  ;;  %v4974_v40 = vrot.slane %v79_v35, %v4947_v29  ;;  %v180_v44 = vrot.slane %v56_v30, %v4958_v34  ;;  %v5041_v27 = vld [vmem:[%s5697_s25 + $0x8] sm:$0xff] }
   0xf   :  { %4512 = vmatprep.subr.bf16.mxu0 %v4511_v21 }
  0x10   :  { %v4954_v33 = vadd.f32 %v862_v31, %v62_v32  ;;  %v4991_v45 = vadd.f32 %v180_v44, %v62_v32 }
  0x12   :  { %4514 = vmatpush1.bf16.msra.mxu0 %v4513_v24 }
  0x13   :  { %4219 = vmatprep.subr.mxu0 %v4791_v7 }
  0x15   :  { %3891 = vmatmul.mubr.msk.f32.vlgmr.msra.gmra.mrb[0].mxu0 %vm91_vm0, %v4941_v25 }
  0x16   :  { %168 = vmatprep.mubr.f32.mxu0 %v4791_v7 }
  0x19   :  { %3892 = vmatmul.mubr.msk.f32.gmra.mrb[2].mxu0 %vm91_vm0, %v5041_v27 }
  0x1a   :  { %4221 = vmatprep.mubr.msk.f32.mxu0 %vm4792_vm2, %v4791_v7 }
  0xe8   :  { %v164_v37 = vpop.f32.mrb[0].mxu0 }
  0xe9   :  { %v4967_v38 = vadd.f32 %v164_v37, %v4964_v36  ;;  %v166_v39 = vpop.f32.mrb[1].mxu0 }
  0xea   :  { %v4982_v43 = vadd.f32 %v166_v39, %v4974_v40 }
  0xeb   :  { %348 = vrot.lane.b32.xlu1 %v4967_v38, %s5694_s1  ;;  %183 = vrot.lane.b32.xlu0 %v4967_v38, %s4794_s30  ;;  %v4978_v42 = vmul.f32 0.25, %v4967_v38 }
 0x15d   :  { %v184_v41 = vpop.permute.xlu0 %183  ;;  %v349_v55 = vpop.permute.xlu1 %348 }
 0x15e   :  { %4175 = vmatpush3.xpose.msk.msra.mxu1 %vm185_vm3, %v184_v41 }
 0x15f   :  { %4179 = vmatprep.subr.mxu1 %v4791_v7 }
 0x161   :  { %4177 = vmatmul.mubr.msk.f32.vlgmr.msra.gmra.mrb[0].mxu1 %vm185_vm3, %v4978_v42 }
 0x162   :  { %4180 = vmatpush3.msra.mxu1 %v4982_v43  ;;  %4181 = vmatprep.mubr.msk.f32.mxu1 %vm4792_vm2, %v4791_v7 }
 0x163   :  { %4184 = vmatprep.subr.mxu1 %v4791_v7 }
 0x234   :  { %v257_v46 = vpop.f32.mrb[0].mxu1 }
 0x235   :  { %v258_v47 = vadd.f32 %v257_v46, %v4991_v45  ;;  %v4178_v48 = vpop.f32.mrb[1].mxu1  ;;  %v170_v46 = vpop.f32.mrb[2].mxu0 }
 0x237   :  { %v262_v49 = vsel %vm261_vm4, %v258_v47, -inf }
 0x238   :  { %263 = vmax.xlane.f32.xlu0 %v262_v49  ;;  %v172_v49 = vpop.f32.mrb[3].mxu0 }
 0x24e   :  { %436 = vrot.lane.b32.xlu0 %v4982_v43, %s4795_s0 }
 0x2c5   :  { %v264_v50 = vpop.xlane.xlu0 %263 }
 0x2c6   :  { %v265_v51 = vsub.f32 %v258_v47, %v264_v50  ;;  %v171_v47 = vadd.f32 %v170_v46, %v4964_v36  ;;  %v5067_v50 = vadd.f32 %v172_v49, %v4974_v40 }
 0x2c8   :  { %v266_v52 = vmul.f32 1.442695, %v265_v51  ;;  %v176_v48 = vmul.f32 0.25, %v171_v47  ;;  %4220 = vmatpush3.msra.mxu0 %v5067_v50 }
 0x2c9   :  { %v437_v60 = vpop.permute.xlu0 %436  ;;  %4229 = vmatprep.subr.mxu0 %v4791_v7 }
 0x2ca   :  { %4687 = vpow2.f32 %v266_v52 }
 0x2d4   :  { %v4688_v53 = vpop.eup %4687 }
 0x2d5   :  { %v268_v54 = vsel %vm261_vm4, %v4688_v53, 0.0 }
 0x2d6   :  { %269 = vadd.xlane.f32.xlu1 %v268_v54 }
 0x2e7   :  { %346 = vrot.lane.b32.xlu1 %v4978_v42, %s4795_s0 }
 0x363   :  { %v270_v56 = vpop.xlane.xlu1 %269 }
 0x364   :  { %4689 = vrcp.f32 %v270_v56 }
 0x367   :  { %v347_v59 = vpop.permute.xlu1 %346 }
 0x36e   :  { %v4690_v57 = vpop.eup %4689 }
 0x36f   :  { %v272_v58 = vmul.f32 %v4690_v57, %v4688_v53 }
 0x371   :  { %4182 = vmatmul.mubr.msk.f32.vlgmr.msra.gmra.mrb[2].mxu1 %vm261_vm4, %v272_v58 }
 0x372   :  { %4185 = vmatpush3.xpose.msk.msra.mxu1 %vm185_vm3, %v349_v55  ;;  %4186 = vmatprep.mubr.msk.f32.mxu1 %vm4792_vm2, %v4791_v7 }
 0x373   :  { %4189 = vmatprep.subr.mxu1 %v4791_v7 }
 0x375   :  { %4187 = vmatmul.mubr.msk.f32.vlgmr.msra.gmra.mrb[4].mxu1 %vm185_vm3, %v347_v59 }
 0x376   :  { %4190 = vmatpush3.msra.mxu1 %v437_v60  ;;  %4191 = vmatprep.mubr.msk.f32.mxu1 %vm4792_vm2, %v4791_v7 }
 0x377   :  { %4194 = vmatprep.subr.mxu1 %v4791_v7 }
 0x444   :  { %v5009_v61 = vpop.f32.mrb[2].mxu1 }
 0x445   :  { %v4183_v62 = vpop.f32.mrb[3].mxu1 }
 0x448   :  { %v420_v63 = vpop.f32.mrb[4].mxu1 }
 0x449   :  { %v421_v0 = vadd.f32 %v420_v63, %v4991_v45  ;;  %v4188_v1 = vpop.f32.mrb[5].mxu1 }
 0x44b   :  { %v424_v2 = vsel %vm261_vm4, %v421_v0, -inf }
 0x44c   :  { %425 = vmax.xlane.f32.xlu1 %v424_v2 }
 0x45d   :  { %512 = vrot.lane.b32.xlu1 %v4978_v42, %s4796_s17 }
 0x4d9   :  { %v426_v3 = vpop.xlane.xlu1 %425 }
 0x4da   :  { %v427_v4 = vsub.f32 %v421_v0, %v426_v3 }
 0x4dc   :  { %v428_v5 = vmul.f32 1.442695, %v427_v4 }
 0x4dd   :  { %v513_v13 = vpop.permute.xlu1 %512 }
 0x4de   :  { %4691 = vpow2.f32 %v428_v5 }
 0x4e8   :  { %v4692_v6 = vpop.eup %4691 }
 0x4e9   :  { %v430_v8 = vsel %vm261_vm4, %v4692_v6, 0.0 }
 0x4ea   :  { %431 = vadd.xlane.f32.xlu0 %v430_v8 }
 0x500   :  { %514 = vrot.lane.b32.xlu0 %v4967_v38, %s4797_s18 }
 0x577   :  { %v432_v9 = vpop.xlane.xlu0 %431 }
 0x578   :  { %4693 = vrcp.f32 %v432_v9 }
 0x57b   :  { %v515_v12 = vpop.permute.xlu0 %514 }
 0x582   :  { %v4694_v10 = vpop.eup %4693 }
 0x583   :  { %v434_v11 = vmul.f32 %v4694_v10, %v4692_v6 }
 0x585   :  { %4192 = vmatmul.mubr.msk.f32.vlgmr.msra.gmra.mrb[6].mxu1 %vm261_vm4, %v434_v11 }
 0x586   :  { %4195 = vmatpush3.xpose.msk.msra.mxu1 %vm185_vm3, %v515_v12  ;;  %4196 = vmatprep.mubr.msk.f32.mxu1 %vm4792_vm2, %v4791_v7 }
 0x587   :  { %4199 = vmatprep.subr.mxu1 %v4791_v7 }
 0x589   :  { %4197 = vmatmul.mubr.msk.f32.vlgmr.msra.gmra.mrb[8].mxu1 %vm185_vm3, %v513_v13 }
 0x58a   :  { %4201 = vmatprep.mubr.msk.f32.mxu1 %vm4792_vm2, %v4791_v7 }
 0x658   :  { %v5026_v14 = vpop.f32.mrb[6].mxu1 }
 0x659   :  { %v4193_v15 = vpop.f32.mrb[7].mxu1 }
 0x65c   :  { %v586_v16 = vpop.f32.mrb[8].mxu1 }
 0x65d   :  { %v587_v17 = vadd.f32 %v586_v16, %v4991_v45  ;;  %v4198_v18 = vpop.f32.mrb[9].mxu1 }
 0x65f   :  { %v590_v19 = vsel %vm261_vm4, %v587_v17, -inf }
 0x660   :  { %591 = vmax.xlane.f32.xlu0 %v590_v19 }
 0x676   :  { %601 = vrot.lane.b32.xlu0 %v4982_v43, %s4796_s17 }
 0x67a   :  { %677 = vrot.lane.b32.xlu0 %v4978_v42, %s4798_s19 }
 0x6ed   :  { %v592_v20 = vpop.xlane.xlu0 %591 }
 0x6ee   :  { %v593_v21 = vsub.f32 %v587_v17, %v592_v20 }
 0x6f0   :  { %v594_v22 = vmul.f32 1.442695, %v593_v21 }
 0x6f1   :  { %v602_v23 = vpop.permute.xlu0 %601 }
 0x6f2   :  { %4695 = vpow2.f32 %v594_v22  ;;  %4200 = vmatpush3.msra.mxu1 %v602_v23 }
 0x6f3   :  { %4204 = vmatprep.subr.mxu1 %v4791_v7 }
 0x6f5   :  { %v678_v35 = vpop.permute.xlu0 %677 }
 0x6fc   :  { %v4696_v24 = vpop.eup %4695 }
 0x6fd   :  { %v596_v26 = vsel %vm261_vm4, %v4696_v24, 0.0 }
 0x6fe   :  { %597 = vadd.xlane.f32.xlu1 %v596_v26 }
 0x70f   :  { %679 = vrot.lane.b32.xlu1 %v4967_v38, %s4799_s20 }
 0x78b   :  { %v598_v28 = vpop.xlane.xlu1 %597 }
 0x78c   :  { %4697 = vrcp.f32 %v598_v28 }
 0x78f   :  { %v680_v32 = vpop.permute.xlu1 %679 }
 0x796   :  { %v4698_v30 = vpop.eup %4697 }
 0x797   :  { %v600_v31 = vmul.f32 %v4698_v30, %v4696_v24 }
 0x799   :  { %4202 = vmatmul.mubr.msk.f32.vlgmr.msra.gmra.mrb[10].mxu1 %vm261_vm4, %v600_v31 }
 0x79a   :  { %4205 = vmatpush3.xpose.msk.msra.mxu1 %vm185_vm3, %v680_v32  ;;  %4206 = vmatprep.mubr.msk.f32.mxu1 %vm4792_vm2, %v4791_v7 }
 0x79b   :  { %4209 = vmatprep.subr.mxu1 %v4791_v7 }
 0x79d   :  { %4207 = vmatmul.mubr.msk.f32.vlgmr.msra.gmra.mrb[12].mxu1 %vm185_vm3, %v678_v35 }
 0x79e   :  { %4211 = vmatprep.mubr.msk.f32.mxu1 %vm4792_vm2, %v4791_v7 }
 0x86c   :  { %v5055_v37 = vpop.f32.mrb[10].mxu1 }
 0x86d   :  { %v4203_v38 = vpop.f32.mrb[11].mxu1 }
 0x870   :  { %v751_v39 = vpop.f32.mrb[12].mxu1 }
 0x871   :  { %v752_v41 = vadd.f32 %v751_v39, %v4991_v45  ;;  %v4208_v42 = vpop.f32.mrb[13].mxu1 }
 0x873   :  { %v755_v44 = vsel %vm261_vm4, %v752_v41, -inf }
 0x874   :  { %756 = vmax.xlane.f32.xlu0 %v755_v44 }
 0x88a   :  { %766 = vrot.lane.b32.xlu0 %v4982_v43, %s4798_s19 }
 0x88e   :  { %1028 = vrot.lane.b32.xlu0 %v171_v47, %s5694_s1 }
 0x892   :  { %1026 = vrot.lane.b32.xlu0 %v176_v48, %s4795_s0 }
 0x896   :  { %1194 = vrot.lane.b32.xlu0 %v171_v47, %s4797_s18 }
 0x89a   :  { %1359 = vrot.lane.b32.xlu0 %v171_v47, %s4799_s20 }
 0x901   :  { %v757_v43 = vpop.xlane.xlu0 %756 }
 0x902   :  { %v758_v51 = vsub.f32 %v752_v41, %v757_v43 }
 0x904   :  { %v759_v36 = vmul.f32 1.442695, %v758_v51 }
 0x905   :  { %v767_v52 = vpop.permute.xlu0 %766 }
 0x906   :  { %4699 = vpow2.f32 %v759_v36  ;;  %4210 = vmatpush3.msra.mxu1 %v767_v52 }
 0x907   :  { %4214 = vmatprep.subr.mxu1 %v4791_v7 }
 0x909   :  { %v1029_v55 = vpop.permute.xlu0 %1028 }
 0x90d   :  { %v1027_v58 = vpop.permute.xlu0 %1026 }
 0x910   :  { %v4700_v53 = vpop.eup %4699 }
 0x911   :  { %v761_v54 = vsel %vm261_vm4, %v4700_v53, 0.0  ;;  %v1195_v60 = vpop.permute.xlu0 %1194 }
 0x912   :  { %762 = vadd.xlane.f32.xlu1 %v761_v54 }
 0x915   :  { %v1360_v63 = vpop.permute.xlu0 %1359 }
 0x923   :  { %865 = vrot.lane.b32.xlu1 %v171_v47, %s4794_s30 }
 0x927   :  { %1192 = vrot.lane.b32.xlu1 %v176_v48, %s4796_s17 }
 0x92b   :  { %1357 = vrot.lane.b32.xlu1 %v176_v48, %s4798_s19 }
 0x99f   :  { %v763_v40 = vpop.xlane.xlu1 %762 }
 0x9a0   :  { %4701 = vrcp.f32 %v763_v40 }
 0x9a3   :  { %v866_v59 = vpop.permute.xlu1 %865 }
 0x9a7   :  { %v1193_v62 = vpop.permute.xlu1 %1192 }
 0x9aa   :  { %v4702_v56 = vpop.eup %4701 }
 0x9ab   :  { %v765_v57 = vmul.f32 %v4702_v56, %v4700_v53  ;;  %v1358_v0 = vpop.permute.xlu1 %1357 }
 0x9ad   :  { %4212 = vmatmul.mubr.msk.f32.vlgmr.msra.gmra.mrb[14].mxu1 %vm261_vm4, %v765_v57 }
 0x9ae   :  { %4215 = vmatpush3.xpose.msk.msra.mxu1 %vm185_vm3, %v866_v59  ;;  %4216 = vmatprep.mubr.msk.f32.mxu1 %vm4792_vm2, %v4791_v7 }
 0x9af   :  { %4224 = vmatprep.subr.mxu1 %v4791_v7 }
 0x9b1   :  { %4217 = vmatmul.mubr.msk.f32.vlgmr.msra.gmra.mrb[16].mxu1 %vm185_vm3, %v176_v48 }
 0x9b2   :  { %4225 = vmatpush3.xpose.msk.msra.mxu1 %vm185_vm3, %v1029_v55  ;;  %4226 = vmatprep.mubr.msk.f32.mxu1 %vm4792_vm2, %v4791_v7 }
 0x9b3   :  { %4234 = vmatprep.subr.mxu1 %v4791_v7 }
 0x9b5   :  { %4227 = vmatmul.mubr.msk.f32.vlgmr.msra.gmra.mrb[18].mxu1 %vm185_vm3, %v1027_v58 }
 0x9b6   :  { %4235 = vmatpush3.xpose.msk.msra.mxu1 %vm185_vm3, %v1195_v60  ;;  %4236 = vmatprep.mubr.msk.f32.mxu1 %vm4792_vm2, %v4791_v7 }
 0x9b7   :  { %4244 = vmatprep.subr.mxu1 %v4791_v7 }
 0x9b9   :  { %4237 = vmatmul.mubr.msk.f32.vlgmr.msra.gmra.mrb[20].mxu1 %vm185_vm3, %v1193_v62 }
 0x9ba   :  { %4245 = vmatpush3.xpose.msk.msra.mxu1 %vm185_vm3, %v1360_v63  ;;  %4246 = vmatprep.mubr.msk.f32.mxu1 %vm4792_vm2, %v4791_v7 }
 0x9bd   :  { %4247 = vmatmul.mubr.msk.f32.vlgmr.msra.gmra.mrb[22].mxu1 %vm185_vm3, %v1358_v0 }
 0xa80   :  { %v838_v1 = vpop.f32.mrb[14].mxu1 }
 0xa81   :  { %v4213_v2 = vpop.f32.mrb[15].mxu1 }
 0xa84   :  { %v938_v3 = vpop.f32.mrb[16].mxu1 }
 0xa85   :  { %v939_v4 = vadd.f32 %v938_v3, %v4954_v33  ;;  %v4218_v5 = vpop.f32.mrb[17].mxu1 }
 0xa86   :  { %v1539_v5 = vld [vmem:[%s5680_s4 + $0x10] sm:$0xff] }
 0xa87   :  { %v942_v6 = vsel %vm261_vm4, %v939_v4, -inf }
 0xa88   :  { %943 = vmax.xlane.f32.xlu0 %v942_v6  ;;  %v1100_v8 = vpop.f32.mrb[18].mxu1 }
 0xa89   :  { %v1101_v9 = vadd.f32 %v1100_v8, %v4954_v33  ;;  %v4228_v10 = vpop.f32.mrb[19].mxu1  ;;  %v1540_v8 = vld [vmem:[%s5680_s4 + $0x18] sm:$0xff] }
 0xa8a   :  { %v1541_v10 = vld [vmem:[%s5680_s4 + $0x20] sm:$0xff] }
 0xa8b   :  { %v1104_v11 = vsel %vm261_vm4, %v1101_v9, -inf }
 0xa8c   :  { %1105 = vmax.xlane.f32.xlu1 %v1104_v11  ;;  %v1266_v12 = vpop.f32.mrb[20].mxu1  ;;  %v1542_v11 = vld [vmem:[%s5680_s4 + $0x28] sm:$0xff] }
 0xa8d   :  { %v1267_v13 = vadd.f32 %v1266_v12, %v4954_v33  ;;  %v4238_v15 = vpop.f32.mrb[21].mxu1  ;;  %v4523_v12 = vpack.c.bf16 %v1542_v11, %v1541_v10  ;;  %v1784_v11 = vld [vmem:[%s5686_s10 + $0x30] sm:$0xff] }
 0xa8e   :  { %v1544_v15 = vld [vmem:[%s5680_s4 + $0x38] sm:$0xff] }
 0xa8f   :  { %v1270_v16 = vsel %vm261_vm4, %v1267_v13, -inf }
 0xa90   :  { %1271 = vmax.xlane.f32.xlu0 %v1270_v16  ;;  %v1431_v17 = vpop.f32.mrb[22].mxu1 }
 0xa91   :  { %v1432_v18 = vadd.f32 %v1431_v17, %v4954_v33  ;;  %v4248_v19 = vpop.f32.mrb[23].mxu1 }
 0xa93   :  { %v1435_v20 = vsel %vm261_vm4, %v1432_v18, -inf }
 0xa94   :  { %1436 = vmax.xlane.f32.xlu0 %v1435_v20 }
 0xa9d   :  { %1116 = vrot.lane.b32.xlu1 %v5067_v50, %s4795_s0 }
 0xb15   :  { %v944_v21 = vpop.xlane.xlu0 %943 }
 0xb16   :  { %v945_v22 = vsub.f32 %v939_v4, %v944_v21  ;;  %v1537_v4 = vld [vmem:[%s5680_s4] sm:$0xff] }
 0xb18   :  { %v946_v23 = vmul.f32 1.442695, %v945_v22 }
 0xb19   :  { %v1106_v24 = vpop.xlane.xlu1 %1105 }
 0xb1a   :  { %4703 = vpow2.f32 %v946_v23  ;;  %v1107_v26 = vsub.f32 %v1101_v9, %v1106_v24  ;;  %v4519_v9 = vpack.c.bf16 %v1540_v8, %v1539_v5  ;;  %v1781_v5 = vld [vmem:[%s5686_s10 + $0x18] sm:$0xff]  ;;  %v1782_v8 = vld [vmem:[%s5686_s10 + $0x20] sm:$0xff] }
 0xb1c   :  { %v1108_v28 = vmul.f32 1.442695, %v1107_v26 }
 0xb1d   :  { %v1272_v30 = vpop.xlane.xlu0 %1271  ;;  %v1117_v51 = vpop.permute.xlu1 %1116 }
 0xb1e   :  { %4705 = vpow2.f32 %v1108_v28  ;;  %v1273_v31 = vsub.f32 %v1267_v13, %v1272_v30  ;;  %v1543_v13 = vld [vmem:[%s5680_s4 + $0x30] sm:$0xff] }
 0xb1f   :  { %v4527_v16 = vpack.c.bf16 %v1544_v15, %v1543_v13  ;;  %v1786_v15 = vld [vmem:[%s5686_s10 + $0x40] sm:$0xff] }
 0xb20   :  { %v1274_v32 = vmul.f32 1.442695, %v1273_v31 }
 0xb21   :  { %v1437_v35 = vpop.xlane.xlu0 %1436 }
 0xb22   :  { %4707 = vpow2.f32 %v1274_v32  ;;  %v1438_v38 = vsub.f32 %v1432_v18, %v1437_v35 }
 0xb24   :  { %v4704_v39 = vpop.eup %4703  ;;  %v1439_v41 = vmul.f32 1.442695, %v1438_v38  ;;  %v3917_v38 = vld [vmem:[%s5681_s5] ss:$0 sm:$0xff] }
 0xb25   :  { %v948_v42 = vsel %vm261_vm4, %v4704_v39, 0.0 }
 0xb26   :  { %4709 = vpow2.f32 %v1439_v41  ;;  %949 = vadd.xlane.f32.xlu1 %v948_v42 }
 0xb28   :  { %v4706_v44 = vpop.eup %4705 }
 0xb29   :  { %v1110_v46 = vsel %vm261_vm4, %v4706_v44, 0.0 }
 0xb2a   :  { %1111 = vadd.xlane.f32.xlu0 %v1110_v46 }
 0xb2c   :  { %v4708_v47 = vpop.eup %4707 }
 0xb2d   :  { %v1276_v48 = vsel %vm261_vm4, %v4708_v47, 0.0 }
 0xb2e   :  { %1277 = vadd.xlane.f32.xlu1 %v1276_v48 }
 0xb30   :  { %v4710_v49 = vpop.eup %4709 }
 0xb31   :  { %v1441_v43 = vsel %vm261_vm4, %v4710_v49, 0.0 }
 0xb32   :  { %1442 = vadd.xlane.f32.xlu0 %v1441_v43 }
 0xb3f   :  { %1446 = vrot.lane.b32.xlu1 %v5067_v50, %s4798_s19 }
 0xb43   :  { %843 = vrot.lane.b32.xlu1 %v5026_v14, %s4799_s20 }
 0xb48   :  { %1281 = vrot.lane.b32.xlu0 %v5067_v50, %s4796_s17 }
 0xb4c   :  { %847 = vrot.lane.b32.xlu0 %v5055_v37, %s4797_s18 }
 0xb50   :  { %851 = vrot.lane.b32.xlu0 %v838_v1, %s5694_s1 }
 0xbb3   :  { %v950_v36 = vpop.xlane.xlu1 %949 }
 0xbb4   :  { %4711 = vrcp.f32 %v950_v36 }
 0xbb7   :  { %v1112_v52 = vpop.xlane.xlu0 %1111 }
 0xbb8   :  { %4713 = vrcp.f32 %v1112_v52 }
 0xbbb   :  { %v1278_v53 = vpop.xlane.xlu1 %1277 }
 0xbbc   :  { %4715 = vrcp.f32 %v1278_v53 }
 0xbbe   :  { %v4712_v54 = vpop.eup %4711 }
 0xbbf   :  { %v952_v40 = vmul.f32 %v4712_v54, %v4704_v39  ;;  %v1443_v55 = vpop.xlane.xlu0 %1442  ;;  %v1447_v14 = vpop.permute.xlu1 %1446 }
 0xbc0   :  { %4717 = vrcp.f32 %v1443_v55 }
 0xbc1   :  { %4222 = vmatmul.mubr.msk.f32.vlgmr.msra.gmra.mrb[4].mxu0 %vm261_vm4, %v952_v40 }
 0xbc2   :  { %v4714_v50 = vpop.eup %4713  ;;  %4230 = vmatpush3.msra.mxu0 %v1117_v51  ;;  %4231 = vmatprep.mubr.msk.f32.mxu0 %vm4792_vm2, %v4791_v7 }
 0xbc3   :  { %v1114_v37 = vmul.f32 %v4714_v50, %v4706_v44  ;;  %v1282_v56 = vpop.permute.xlu0 %1281  ;;  %4239 = vmatprep.subr.mxu0 %v4791_v7  ;;  %v844_v59 = vpop.permute.xlu1 %843  ;;  %v1681_v50 = vld [vmem:[%s5684_s8 + $0x8] sm:$0xff] }
 0xbc4   :  { %v854_v63 = vsel %vm185_vm3, %v5009_v61, %v844_v59  ;;  %v1538_v61 = vld [vmem:[%s5680_s4 + $0x8] sm:$0xff]  ;;  %v1684_v59 = vld [vmem:[%s5684_s8 + $0x20] sm:$0xff] }
 0xbc5   :  { %4232 = vmatmul.mubr.msk.f32.vlgmr.msra.gmra.mrb[6].mxu0 %vm261_vm4, %v1114_v37  ;;  %v4515_v6 = vpack.c.bf16 %v1538_v61, %v1537_v4  ;;  %v1780_v4 = vld [vmem:[%s5686_s10 + $0x10] sm:$0xff] }
 0xbc6   :  { %v4716_v57 = vpop.eup %4715  ;;  %4240 = vmatpush3.msra.mxu0 %v1282_v56  ;;  %4241 = vmatprep.mubr.msk.f32.mxu0 %vm4792_vm2, %v4791_v7  ;;  %v1682_v56 = vld [vmem:[%s5684_s8 + $0x10] sm:$0xff] }
 0xbc7   :  { %v1280_v58 = vmul.f32 %v4716_v57, %v4708_v47  ;;  %v848_v60 = vpop.permute.xlu0 %847  ;;  %4249 = vmatprep.subr.mxu0 %v4791_v7  ;;  %4516 = vmatprep.subr.bf16.mxu1 %v4515_v6  ;;  %v1683_v57 = vld [vmem:[%s5684_s8 + $0x18] sm:$0xff] }
 0xbc8   :  { %v856_v1 = vsel %vm855_vm5, %v854_v63, %v848_v60  ;;  %4518 = vmatpush3.bf16.msra.mxu1 %v4515_v6  ;;  %v1685_v60 = vld [vmem:[%s5684_s8 + $0x28] sm:$0xff]  ;;  %v1686_v63 = vld [vmem:[%s5684_s8 + $0x30] sm:$0xff]  ;;  %v4551_v6 = vpack.c.bf16 %v1781_v5, %v1780_v4 }
 0xbc9   :  { %4242 = vmatmul.mubr.msk.f32.vlgmr.msra.gmra.mrb[8].mxu0 %vm261_vm4, %v1280_v58  ;;  %4520 = vmatprep.subr.bf16.mxu1 %v4519_v9  ;;  %v4535_v58 = vpack.c.bf16 %v1683_v57, %v1682_v56 }
 0xbca   :  { %v4718_v62 = vpop.eup %4717  ;;  %4250 = vmatpush3.msra.mxu0 %v1447_v14  ;;  %4251 = vmatprep.mubr.msk.f32.mxu0 %vm4792_vm2, %v4791_v7  ;;  %v1680_v14 = vld [vmem:[%s5684_s8] sm:$0xff] }
 0xbcb   :  { %v1445_v0 = vmul.f32 %v4718_v62, %v4710_v49  ;;  %v852_v2 = vpop.permute.xlu0 %851  ;;  %v4531_v37 = vpack.c.bf16 %v1681_v50, %v1680_v14  ;;  %v4539_v62 = vpack.c.bf16 %v1685_v60, %v1684_v59  ;;  %v3925_v14 = vld [vmem:[%s5687_s11] ss:$0 sm:$0xff] }
 0xbcc   :  { %v858_v3 = vsel %vm857_vm6, %v856_v1, %v852_v2  ;;  %4522 = vmatpush3.bf16.msra.mxu1 %v4519_v9  ;;  %v1778_v2 = vld [vmem:[%s5686_s10] sm:$0xff]  ;;  %v1783_v9 = vld [vmem:[%s5686_s10 + $0x28] sm:$0xff] }
 0xbcd   :  { %4252 = vmatmul.mubr.msk.f32.vlgmr.msra.gmra.mrb[10].mxu0 %vm261_vm4, %v1445_v0  ;;  %4270 = vmatprep.mubr.msk.f32.mxu1 %vm91_vm0, %v858_v3  ;;  %v1687_v0 = vld [vmem:[%s5684_s8 + $0x38] sm:$0xff]  ;;  %v1779_v3 = vld [vmem:[%s5686_s10 + $0x8] sm:$0xff]  ;;  %v4555_v10 = vpack.c.bf16 %v1783_v9, %v1782_v8 }
 0xbce   :  { %4524 = vmatprep.subr.bf16.mxu1 %v4523_v12  ;;  %4532 = vmatprep.subr.bf16.mxu0 %v4531_v37  ;;  %v4543_v1 = vpack.c.bf16 %v1687_v0, %v1686_v63  ;;  %v4547_v61 = vpack.c.bf16 %v1779_v3, %v1778_v2  ;;  %v3929_v9 = vld [vmem:[%s5678_s2 + $0x88] sm:$0xff] }
 0xbcf   :  { %4534 = vmatpush3.bf16.msra.mxu0 %v4531_v37 }
 0xbd0   :  { %4526 = vmatpush3.bf16.msra.mxu1 %v4523_v12  ;;  %4536 = vmatprep.subr.bf16.mxu0 %v4535_v58  ;;  %v1785_v12 = vld [vmem:[%s5686_s10 + $0x38] sm:$0xff] }
 0xbd1   :  { %4528 = vmatprep.subr.bf16.mxu1 %v4527_v16  ;;  %v4559_v13 = vpack.c.bf16 %v1785_v12, %v1784_v11  ;;  %v3928_v12 = vld [vmem:[%s5678_s2 + $0x80] sm:$0xff] }
 0xbd3   :  { %4538 = vmatpush3.bf16.msra.mxu0 %v4535_v58 }
 0xbd4   :  { %4530 = vmatpush3.bf16.msra.mxu1 %v4527_v16  ;;  %4540 = vmatprep.subr.bf16.mxu0 %v4539_v62  ;;  %v1787_v16 = vld [vmem:[%s5686_s10 + $0x48] sm:$0xff] }
 0xbd5   :  { %4548 = vmatprep.subr.bf16.mxu1 %v4547_v61 }
 0xbd7   :  { %4542 = vmatpush3.bf16.msra.mxu0 %v4539_v62 }
 0xbd8   :  { %4544 = vmatprep.subr.bf16.mxu0 %v4543_v1 }
 0xbdb   :  { %4546 = vmatpush3.bf16.msra.mxu0 %v4543_v1 }
 0xc94   :  { %v1022_v17 = vpop.f32.mrb[4].mxu0 }
 0xc95   :  { %v4223_v18 = vpop.f32.mrb[5].mxu0 }
 0xc96   :  { %v1788_v18 = vld [vmem:[%s5686_s10 + $0x50] sm:$0xff] }
 0xc98   :  { %v1188_v19 = vpop.f32.mrb[6].mxu0 }
 0xc99   :  { %1523 = vrot.lane.b32.xlu1 %v1188_v19, %s4799_s20  ;;  %v4233_v20 = vpop.f32.mrb[7].mxu0  ;;  %v1789_v19 = vld [vmem:[%s5686_s10 + $0x58] sm:$0xff] }
 0xc9a   :  { %v4567_v20 = vpack.c.bf16 %v1789_v19, %v1788_v18  ;;  %v3932_v19 = vld [vmem:[%s5678_s2 + $0xa0] sm:$0xff] }
 0xc9c   :  { %v1353_v21 = vpop.f32.mrb[8].mxu0 }
 0xc9d   :  { %1527 = vrot.lane.b32.xlu1 %v1353_v21, %s4797_s18  ;;  %v4243_v22 = vpop.f32.mrb[9].mxu0  ;;  %v1790_v21 = vld [vmem:[%s5686_s10 + $0x60] sm:$0xff] }
 0xc9e   :  { %v1791_v22 = vld [vmem:[%s5686_s10 + $0x68] sm:$0xff] }
 0xca0   :  { %v1518_v23 = vpop.f32.mrb[10].mxu0 }
 0xca1   :  { %1531 = vrot.lane.b32.xlu0 %v1518_v23, %s5694_s1  ;;  %v4253_v24 = vpop.f32.mrb[11].mxu0  ;;  %v4571_v23 = vpack.c.bf16 %v1791_v22, %v1790_v21  ;;  %v3937_v22 = vld [vmem:[%s5678_s2 + $0xc8] sm:$0xff] }
 0xd0b   :  { %v1524_v26 = vpop.permute.xlu1 %1523 }
 0xd0c   :  { %v1534_v30 = vsel %vm185_vm3, %v1022_v17, %v1524_v26  ;;  %v4563_v17 = vpack.c.bf16 %v1787_v16, %v1786_v15  ;;  %v3933_v16 = vld [vmem:[%s5678_s2 + $0xa8] sm:$0xff] }
 0xd0f   :  { %v1528_v28 = vpop.permute.xlu1 %1527 }
 0xd10   :  { %v1535_v31 = vsel %vm855_vm5, %v1534_v30, %v1528_v28 }
 0xd13   :  { %v1532_v32 = vpop.permute.xlu0 %1531 }
 0xd14   :  { %v1536_v35 = vsel %vm857_vm6, %v1535_v31, %v1532_v32 }
 0xd15   :  { %4271 = vmatmul.mubr.msk.f32.vlgmr.msra.gmra.mrb[24].mxu1 %vm91_vm0, %v1536_v35 }
 0xd16   :  { %4550 = vmatpush3.bf16.msra.mxu1 %v4547_v61 }
 0xd17   :  { %4552 = vmatprep.subr.bf16.mxu1 %v4551_v6 }
 0xd1a   :  { %4554 = vmatpush3.bf16.msra.mxu1 %v4551_v6 }
 0xd1b   :  { %4556 = vmatprep.subr.bf16.mxu1 %v4555_v10 }
 0xd1e   :  { %4558 = vmatpush3.bf16.msra.mxu1 %v4555_v10  ;;  %v3931_v10 = vld [vmem:[%s5678_s2 + $0x98] sm:$0xff] }
 0xd1f   :  { %4560 = vmatprep.subr.bf16.mxu1 %v4559_v13  ;;  %v4579_v11 = vpack.c.bf16 %v3931_v10, %v3929_v9 }
 0xd21   :  { %4580 = vmatprep.subr.bf16.mxu0 %v4579_v11 }
 0xd22   :  { %4562 = vmatpush3.bf16.msra.mxu1 %v4559_v13  ;;  %v3930_v13 = vld [vmem:[%s5678_s2 + $0x90] sm:$0xff] }
 0xd23   :  { %4564 = vmatprep.subr.bf16.mxu1 %v4563_v17  ;;  %v4581_v15 = vpack.c.bf16 %v3930_v13, %v3928_v12 }
 0xd26   :  { %4566 = vmatpush3.bf16.msra.mxu1 %v4563_v17  ;;  %v3935_v17 = vld [vmem:[%s5678_s2 + $0xb8] sm:$0xff] }
 0xd27   :  { %4568 = vmatprep.subr.bf16.mxu1 %v4567_v20  ;;  %v4583_v18 = vpack.c.bf16 %v3935_v17, %v3933_v16 }
 0xd2a   :  { %4570 = vmatpush3.bf16.msra.mxu1 %v4567_v20  ;;  %v3934_v20 = vld [vmem:[%s5678_s2 + $0xb0] sm:$0xff] }
 0xd2b   :  { %4572 = vmatprep.subr.bf16.mxu1 %v4571_v23  ;;  %v4585_v21 = vpack.c.bf16 %v3934_v20, %v3932_v19 }
 0xd2e   :  { %4574 = vmatpush3.bf16.msra.mxu1 %v4571_v23  ;;  %v3939_v23 = vld [vmem:[%s5678_s2 + $0xd8] sm:$0xff] }
 0xde8   :  { %v4272_v39 = vpop.f32.mrb[24].mxu1 }
 0xde9   :  { %v1630_v41 = vadd.f32 %v4272_v39, %v3917_v38  ;;  %v1624_v42 = vpop.f32.mrb[25].mxu1 }
 0xdea   :  { %v1625_v44 = vadd.f32 %v3917_v38, %v1624_v42  ;;  %v3920_v38 = vld [vmem:[%s5682_s6] ss:$0 sm:$0xff] }
 0xdeb   :  { %v1634_v46 = vadd.f32 %v1630_v41, %v5041_v27 }
 0xdec   :  { %v1633_v47 = vadd.f32 %v1625_v44, %v4941_v25  ;;  %v3921_v44 = vld [vmem:[%s5683_s7] ss:$0 sm:$0xff] }
 0xded   :  { %v1640_v48 = vsel %vm91_vm0, %v1634_v46, 0.0 }
 0xdee   :  { %1641 = vadd.xlane.f32.xlu0 %v1640_v48  ;;  %v1637_v49 = vsel %vm91_vm0, %v1633_v47, 0.0 }
 0xdef   :  { %1638 = vadd.xlane.f32.xlu1 %v1637_v49 }
 0xe7b   :  { %v1642_v43 = vpop.xlane.xlu0 %1641 }
 0xe7c   :  { %v1645_v51 = vmul.f32 0.015625, %v1642_v43  ;;  %v1639_v36 = vpop.xlane.xlu1 %1638  ;;  %v1792_v43 = vld [vmem:[%s5686_s10 + $0x70] sm:$0xff] }
 0xe7d   :  { %v1644_v52 = vmul.f32 0.015625, %v1639_v36 }
 0xe7e   :  { %v5174_v53 = vsub.f32 %v1634_v46, %v1645_v51  ;;  %v1793_v51 = vld [vmem:[%s5686_s10 + $0x78] sm:$0xff] }
 0xe7f   :  { %v5176_v54 = vsub.f32 %v1633_v47, %v1644_v52  ;;  %v4575_v36 = vpack.c.bf16 %v1793_v51, %v1792_v43  ;;  %v3922_v52 = vld [vmem:[%s5685_s9] ss:$0 sm:$0xff] }
 0xe80   :  { %v1649_v40 = vmul.f32 %v5174_v53, %v5174_v53  ;;  %v3926_v51 = vld [vmem:[%s5688_s12] ss:$0 sm:$0xff] }
 0xe81   :  { %v1648_v25 = vmul.f32 %v5176_v54, %v5176_v54  ;;  %4576 = vmatprep.subr.bf16.mxu1 %v4575_v36 }
 0xe82   :  { %v1653_v27 = vsel %vm91_vm0, %v1649_v40, 0.0  ;;  %4578 = vmatpush3.bf16.msra.mxu1 %v4575_v36 }
 0xe83   :  { %1654 = vadd.xlane.f32.xlu1 %v1653_v27  ;;  %v1650_v55 = vsel %vm91_vm0, %v1648_v25, 0.0  ;;  %4342 = vmatprep.subr.mxu1 %v4791_v7 }
 0xe84   :  { %1651 = vadd.xlane.f32.xlu0 %v1650_v55 }
 0xf10   :  { %v1655_v24 = vpop.xlane.xlu1 %1654 }
 0xf11   :  { %v1657_v26 = vmul.f32 0.015625, %v1655_v24  ;;  %v1652_v28 = vpop.xlane.xlu0 %1651  ;;  %v4587_v24 = vpack.c.bf16 %v3939_v23, %v3937_v22 }
 0xf12   :  { %v1656_v30 = vmul.f32 0.015625, %v1652_v28  ;;  %v3938_v28 = vld [vmem:[%s5678_s2 + $0xd0] sm:$0xff] }
 0xf13   :  { %v1659_v31 = vadd.f32 1e-05, %v1657_v26  ;;  %v3936_v26 = vld [vmem:[%s5678_s2 + $0xc0] sm:$0xff] }
 0xf14   :  { %v1658_v32 = vadd.f32 1e-05, %v1656_v30  ;;  %v4589_v30 = vpack.c.bf16 %v3938_v28, %v3936_v26 }
 0xf15   :  { %4719 = vrsqrt.f32 %v1659_v31  ;;  %v3941_v31 = vld [vmem:[%s5678_s2 + $0xe8] sm:$0xff] }
 0xf16   :  { %4721 = vrsqrt.f32 %v1658_v32  ;;  %v3943_v32 = vld [vmem:[%s5678_s2 + $0xf8] sm:$0xff] }
 0xf1f   :  { %v4720_v35 = vpop.eup %4719 }
 0xf20   :  { %v4722_v39 = vpop.eup %4721  ;;  %v1663_v41 = vmul.f32 %v4720_v35, %v5174_v53  ;;  %v3940_v35 = vld [vmem:[%s5678_s2 + $0xe0] sm:$0xff] }
 0xf21   :  { %v1662_v42 = vmul.f32 %v4722_v39, %v5176_v54  ;;  %v3942_v39 = vld [vmem:[%s5678_s2 + $0xf0] sm:$0xff] }
 0xf22   :  { %v1671_v46 = vmul.f32 %v3920_v38, %v1663_v41  ;;  %v4593_v41 = vpack.c.bf16 %v3942_v39, %v3940_v35 }
 0xf23   :  { %v1670_v47 = vmul.f32 %v3920_v38, %v1662_v42  ;;  %v4591_v38 = vpack.c.bf16 %v3943_v32, %v3941_v31 }
 0xf24   :  { %v1679_v49 = vadd.f32 %v3921_v44, %v1671_v46 }
 0xf25   :  { %v1678_v48 = vadd.f32 %v3921_v44, %v1670_v47 }
 0xf27   :  { %4289 = vmatprep.mubr.msk.f32.mxu0 %vm91_vm0, %v1678_v48 }
 0xf28   :  { %4290 = vmatmul.mubr.msk.f32.vlgmr.msra.gmra.mrb[12].mxu0 %vm91_vm0, %v1679_v49 }
 0xf29   :  { %2022 = vmatprep.mubr.f32.mxu0 %v4791_v7  ;;  %4582 = vmatpush1.bf16.msra.mxu0 %v4581_v15 }
 0xf2a   :  { %4584 = vmatprep.subr.bf16.mxu0 %v4583_v18 }
 0xf2d   :  { %4586 = vmatpush1.bf16.msra.mxu0 %v4585_v21 }
 0xf2e   :  { %4588 = vmatprep.subr.bf16.mxu0 %v4587_v24 }
 0xf31   :  { %4590 = vmatpush1.bf16.msra.mxu0 %v4589_v30 }
 0xf32   :  { %4592 = vmatprep.subr.bf16.mxu0 %v4591_v38 }
 0xf35   :  { %4594 = vmatpush1.bf16.msra.mxu0 %v4593_v41 }
 0xf36   :  { %4327 = vmatprep.subr.mxu0 %v4791_v7 }
 0xffb   :  { %v4291_v53 = vpop.f32.mrb[12].mxu0 }
 0xffc   :  { %v1773_v54 = vadd.f32 %v4291_v53, %v3922_v52  ;;  %v1767_v40 = vpop.f32.mrb[13].mxu0 }
 0xffd   :  { %v1768_v25 = vadd.f32 %v3922_v52, %v1767_v40  ;;  %v3927_v52 = vld [vmem:[%s5689_s13] ss:$0 sm:$0xff] }
 0xffe   :  { %v1777_v55 = vmax.f32 %v1773_v54, 0.0 }
 0xfff   :  { %v1776_v27 = vmax.f32 %v1768_v25, 0.0 }
0x1001   :  { %4324 = vmatprep.mubr.f32.mxu1 %v1776_v27 }
0x1002   :  { %4325 = vmatmul.mubr.f32.vlgmr.msra.gmra.mrb[26].mxu1 %v1777_v55 }
0x1003   :  { %4344 = vmatprep.mubr.msk.f32.mxu1 %vm4792_vm2, %v4791_v7 }
0x10d5   :  { %v4326_v50 = vpop.f32.mrb[26].mxu1 }
0x10d6   :  { %v1867_v37 = vpop.f32.mrb[27].mxu1  ;;  %v1873_v56 = vadd.f32 %v4326_v50, %v3925_v14 }
0x10d7   :  { %v1868_v57 = vadd.f32 %v3925_v14, %v1867_v37  ;;  %v3944_v14 = vld [vmem:[%s5679_s3 + $0x2] sm:$0x3]  ;;  %s5698_s3 = smov 48  }
0x10d8   :  { %v1877_v60 = vadd.f32 %v1873_v56, %v1679_v49  ;;  %v1945_v50 = vrot.slane %v3944_v14, %v4958_v34 }
0x10d9   :  { %v1876_v58 = vadd.f32 %v1868_v57, %v1678_v48 }
0x10da   :  { %v1883_v62 = vsel %vm91_vm0, %v1877_v60, 0.0 }
0x10db   :  { %v1880_v59 = vsel %vm91_vm0, %v1876_v58, 0.0 }
0x10dc   :  { %1881 = vadd.xlane.f32.xlu0 %v1880_v59 }
0x10e0   :  { %1884 = vadd.xlane.f32.xlu0 %v1883_v62 }
0x1169   :  { %v1882_v63 = vpop.xlane.xlu0 %1881 }
0x116a   :  { %v1886_v0 = vmul.f32 0.015625, %v1882_v63 }
0x116c   :  { %v1888_v1 = vsub.f32 %v1876_v58, %v1886_v0  ;;  %v1949_v58 = vrot.slane %v3944_v14, %v4947_v29 }
0x116d   :  { %v1885_v2 = vpop.xlane.xlu0 %1884 }
0x116e   :  { %v1887_v3 = vmul.f32 0.015625, %v1885_v2  ;;  %v1890_v4 = vmul.f32 %v1888_v1, %v1888_v1 }
0x1170   :  { %v1889_v61 = vsub.f32 %v1877_v60, %v1887_v3  ;;  %v1892_v5 = vsel %vm91_vm0, %v1890_v4, 0.0 }
0x1171   :  { %1893 = vadd.xlane.f32.xlu1 %v1892_v5 }
0x1172   :  { %v1891_v6 = vmul.f32 %v1889_v61, %v1889_v61 }
0x1174   :  { %v1895_v8 = vsel %vm91_vm0, %v1891_v6, 0.0 }
0x1175   :  { %1896 = vadd.xlane.f32.xlu1 %v1895_v8 }
0x11fe   :  { %v1894_v42 = vpop.xlane.xlu1 %1893 }
0x11ff   :  { %v1898_v44 = vmul.f32 0.015625, %v1894_v42 }
0x1201   :  { %v1900_v46 = vadd.f32 1e-05, %v1898_v44 }
0x1202   :  { %v1897_v47 = vpop.xlane.xlu1 %1896 }
0x1203   :  { %4723 = vrsqrt.f32 %v1900_v46  ;;  %v1899_v48 = vmul.f32 0.015625, %v1897_v47 }
0x1205   :  { %v1901_v49 = vadd.f32 1e-05, %v1899_v48 }
0x1207   :  { %4725 = vrsqrt.f32 %v1901_v49 }
0x120d   :  { %v4724_v43 = vpop.eup %4723 }
0x120e   :  { %v1904_v36 = vmul.f32 %v4724_v43, %v1888_v1 }
0x1210   :  { %v1912_v53 = vmul.f32 %v3926_v51, %v1904_v36 }
0x1211   :  { %v4726_v54 = vpop.eup %4725 }
0x1212   :  { %v5335_v40 = vadd.f32 %v3927_v52, %v1912_v53  ;;  %v1905_v25 = vmul.f32 %v4726_v54, %v1889_v61 }
0x1214   :  { %3945 = vmatmul.mubr.msk.f32.vlgmr.msra.gmra.mrb[14].mxu0 %vm91_vm0, %v5335_v40  ;;  %v1913_v27 = vmul.f32 %v3926_v51, %v1905_v25 }
0x1215   :  { %2028 = vmatprep.mubr.f32.mxu0 %v4791_v7 }
0x1216   :  { %v5340_v55 = vadd.f32 %v3927_v52, %v1913_v27 }
0x1218   :  { %3946 = vmatmul.mubr.msk.f32.gmra.mrb[16].mxu0 %vm91_vm0, %v5340_v55 }
0x1219   :  { %4329 = vmatprep.mubr.msk.f32.mxu0 %vm4792_vm2, %v4791_v7 }
0x12e7   :  { %v2024_v37 = vpop.f32.mrb[14].mxu0 }
0x12e8   :  { %v2025_v56 = vadd.f32 %v2024_v37, %v1945_v50  ;;  %v2026_v57 = vpop.f32.mrb[15].mxu0 }
0x12e9   :  { %v5363_v1 = vadd.f32 %v2026_v57, %v1949_v58 }
0x12ea   :  { %2038 = vrot.lane.b32.xlu0 %v2025_v56, %s4794_s30  ;;  %v2035_v62 = vmul.f32 0.25, %v2025_v56 }
0x12eb   :  { %v2030_v59 = vpop.f32.mrb[16].mxu0 }
0x12ec   :  { %v2032_v60 = vpop.f32.mrb[17].mxu0  ;;  %v2031_v0 = vadd.f32 %v2030_v59, %v1945_v50 }
0x12ed   :  { %v5352_v63 = vadd.f32 %v2032_v60, %v1949_v58 }
0x12ee   :  { %2199 = vrot.lane.b32.xlu0 %v2035_v62, %s4795_s0  ;;  %v2036_v34 = vmul.f32 0.25, %v2031_v0 }
0x12f2   :  { %2367 = vrot.lane.b32.xlu0 %v2025_v56, %s4797_s18 }
0x12f6   :  { %2532 = vrot.lane.b32.xlu0 %v2025_v56, %s4799_s20 }
0x12fa   :  { %2711 = vrot.lane.b32.xlu0 %v2031_v0, %s4794_s30 }
0x12fe   :  { %2872 = vrot.lane.b32.xlu0 %v2036_v34, %s4795_s0 }
0x1302   :  { %3038 = vrot.lane.b32.xlu0 %v2036_v34, %s4796_s17 }
0x1306   :  { %3203 = vrot.lane.b32.xlu0 %v2036_v34, %s4798_s19 }
0x135c   :  { %v2039_v29 = vpop.permute.xlu0 %2038 }
0x135d   :  { %4328 = vmatpush3.xpose.msk.msra.mxu0 %vm185_vm3, %v2039_v29 }
0x135e   :  { %4332 = vmatprep.subr.mxu0 %v4791_v7 }
0x1360   :  { %4330 = vmatmul.mubr.msk.f32.vlgmr.msra.gmra.mrb[18].mxu0 %vm185_vm3, %v2035_v62  ;;  %v2200_v13 = vpop.permute.xlu0 %2199 }
0x1361   :  { %4333 = vmatpush3.msra.mxu0 %v5363_v1  ;;  %4334 = vmatprep.mubr.msk.f32.mxu0 %vm4792_vm2, %v4791_v7 }
0x1362   :  { %4337 = vmatprep.subr.mxu0 %v4791_v7 }
0x1364   :  { %v2368_v16 = vpop.permute.xlu0 %2367 }
0x1368   :  { %v2533_v19 = vpop.permute.xlu0 %2532 }
0x136c   :  { %v2712_v21 = vpop.permute.xlu0 %2711 }
0x1370   :  { %v2873_v23 = vpop.permute.xlu0 %2872 }
0x1374   :  { %v3039_v26 = vpop.permute.xlu0 %3038 }
0x1378   :  { %v3204_v30 = vpop.permute.xlu0 %3203 }
0x1433   :  { %v2111_v2 = vpop.f32.mrb[18].mxu0 }
0x1434   :  { %v2112_v3 = vadd.f32 %v2111_v2, %v4991_v45  ;;  %v4331_v4 = vpop.f32.mrb[19].mxu0 }
0x1436   :  { %v2115_v61 = vsel %vm261_vm4, %v2112_v3, -inf }
0x1437   :  { %2116 = vmax.xlane.f32.xlu1 %v2115_v61 }
0x1448   :  { %2201 = vrot.lane.b32.xlu1 %v2025_v56, %s5698_s3 }
0x14c4   :  { %v2117_v5 = vpop.xlane.xlu1 %2116 }
0x14c5   :  { %v2118_v6 = vsub.f32 %v2112_v3, %v2117_v5 }
0x14c7   :  { %v2119_v8 = vmul.f32 1.442695, %v2118_v6 }
0x14c8   :  { %v2202_v11 = vpop.permute.xlu1 %2201 }
0x14c9   :  { %4727 = vpow2.f32 %v2119_v8 }
0x14d3   :  { %v4728_v9 = vpop.eup %4727 }
0x14d4   :  { %v2121_v10 = vsel %vm261_vm4, %v4728_v9, 0.0 }
0x14d5   :  { %2122 = vadd.xlane.f32.xlu1 %v2121_v10 }
0x14e6   :  { %2365 = vrot.lane.b32.xlu1 %v2035_v62, %s4796_s17 }
0x14ea   :  { %2530 = vrot.lane.b32.xlu1 %v2035_v62, %s4798_s19 }
0x14ee   :  { %2874 = vrot.lane.b32.xlu1 %v2031_v0, %s5698_s3 }
0x14f2   :  { %3040 = vrot.lane.b32.xlu1 %v2031_v0, %s4797_s18 }
0x14f6   :  { %3205 = vrot.lane.b32.xlu1 %v2031_v0, %s4799_s20 }
0x1562   :  { %v2123_v12 = vpop.xlane.xlu1 %2122 }
0x1563   :  { %4729 = vrcp.f32 %v2123_v12 }
0x1566   :  { %v2366_v18 = vpop.permute.xlu1 %2365 }
0x156a   :  { %v2531_v20 = vpop.permute.xlu1 %2530 }
0x156d   :  { %v4730_v15 = vpop.eup %4729 }
0x156e   :  { %v2125_v17 = vmul.f32 %v4730_v15, %v4728_v9  ;;  %v2875_v22 = vpop.permute.xlu1 %2874 }
0x1570   :  { %4335 = vmatmul.mubr.msk.f32.vlgmr.msra.gmra.mrb[20].mxu0 %vm261_vm4, %v2125_v17 }
0x1571   :  { %4338 = vmatpush3.xpose.msk.msra.mxu0 %vm185_vm3, %v2202_v11  ;;  %4339 = vmatprep.mubr.msk.f32.mxu0 %vm4792_vm2, %v4791_v7 }
0x1572   :  { %4347 = vmatprep.subr.mxu0 %v4791_v7  ;;  %v3041_v24 = vpop.permute.xlu1 %3040 }
0x1574   :  { %4340 = vmatmul.mubr.msk.f32.vlgmr.msra.gmra.mrb[22].mxu0 %vm185_vm3, %v2200_v13 }
0x1575   :  { %4348 = vmatpush3.xpose.msk.msra.mxu0 %vm185_vm3, %v2368_v16  ;;  %4349 = vmatprep.mubr.msk.f32.mxu0 %vm4792_vm2, %v4791_v7 }
0x1576   :  { %4357 = vmatprep.subr.mxu0 %v4791_v7  ;;  %v3206_v28 = vpop.permute.xlu1 %3205 }
0x1578   :  { %4350 = vmatmul.mubr.msk.f32.vlgmr.msra.gmra.mrb[24].mxu0 %vm185_vm3, %v2366_v18 }
0x1579   :  { %4358 = vmatpush3.xpose.msk.msra.mxu0 %vm185_vm3, %v2533_v19  ;;  %4359 = vmatprep.mubr.msk.f32.mxu0 %vm4792_vm2, %v4791_v7 }
0x157a   :  { %4367 = vmatprep.subr.mxu0 %v4791_v7 }
0x157c   :  { %4360 = vmatmul.mubr.msk.f32.vlgmr.msra.gmra.mrb[26].mxu0 %vm185_vm3, %v2531_v20 }
0x157d   :  { %4368 = vmatpush3.xpose.msk.msra.mxu0 %vm185_vm3, %v2712_v21  ;;  %4369 = vmatprep.mubr.msk.f32.mxu0 %vm4792_vm2, %v4791_v7 }
0x157e   :  { %4377 = vmatprep.subr.mxu0 %v4791_v7 }
0x1580   :  { %4370 = vmatmul.mubr.msk.f32.vlgmr.msra.gmra.mrb[28].mxu0 %vm185_vm3, %v2036_v34 }
0x1581   :  { %4378 = vmatpush3.xpose.msk.msra.mxu0 %vm185_vm3, %v2875_v22  ;;  %4379 = vmatprep.mubr.msk.f32.mxu0 %vm4792_vm2, %v4791_v7 }
0x1582   :  { %4387 = vmatprep.subr.mxu0 %v4791_v7 }
0x1584   :  { %4380 = vmatmul.mubr.msk.f32.vlgmr.msra.gmra.mrb[30].mxu0 %vm185_vm3, %v2873_v23 }
0x1585   :  { %4388 = vmatpush3.xpose.msk.msra.mxu0 %vm185_vm3, %v3041_v24  ;;  %4389 = vmatprep.mubr.msk.f32.mxu0 %vm4792_vm2, %v4791_v7 }
0x1586   :  { %4397 = vmatprep.subr.mxu0 %v4791_v7 }
0x1588   :  { %4390 = vmatmul.mubr.msk.f32.vlgmr.msra.gmra.mrb[32].mxu0 %vm185_vm3, %v3039_v26 }
0x1589   :  { %4398 = vmatpush3.xpose.msk.msra.mxu0 %vm185_vm3, %v3206_v28  ;;  %4399 = vmatprep.mubr.msk.f32.mxu0 %vm4792_vm2, %v4791_v7 }
0x158c   :  { %4400 = vmatmul.mubr.msk.f32.vlgmr.msra.gmra.mrb[34].mxu0 %vm185_vm3, %v3204_v30 }
0x1643   :  { %v5414_v31 = vpop.f32.mrb[20].mxu0 }
0x1644   :  { %v4336_v32 = vpop.f32.mrb[21].mxu0 }
0x1647   :  { %v2273_v35 = vpop.f32.mrb[22].mxu0 }
0x1648   :  { %v2274_v38 = vadd.f32 %v2273_v35, %v4991_v45  ;;  %v4341_v39 = vpop.f32.mrb[23].mxu0 }
0x164a   :  { %v2277_v41 = vsel %vm261_vm4, %v2274_v38, -inf }
0x164b   :  { %2278 = vmax.xlane.f32.xlu1 %v2277_v41  ;;  %v2439_v42 = vpop.f32.mrb[24].mxu0 }
0x164c   :  { %v2440_v44 = vadd.f32 %v2439_v42, %v4991_v45  ;;  %v4351_v46 = vpop.f32.mrb[25].mxu0 }
0x164e   :  { %v2443_v47 = vsel %vm261_vm4, %v2440_v44, -inf }
0x164f   :  { %2444 = vmax.xlane.f32.xlu0 %v2443_v47  ;;  %v2604_v48 = vpop.f32.mrb[26].mxu0 }
0x1650   :  { %v2605_v49 = vadd.f32 %v2604_v48, %v4991_v45  ;;  %v4361_v43 = vpop.f32.mrb[27].mxu0 }
0x1652   :  { %v2608_v51 = vsel %vm261_vm4, %v2605_v49, -inf }
0x1653   :  { %2609 = vmax.xlane.f32.xlu0 %v2608_v51  ;;  %v2784_v36 = vpop.f32.mrb[28].mxu0 }
0x1654   :  { %v2785_v52 = vadd.f32 %v2784_v36, %v4954_v33  ;;  %v4371_v53 = vpop.f32.mrb[29].mxu0 }
0x1656   :  { %v2788_v54 = vsel %vm261_vm4, %v2785_v52, -inf }
0x1657   :  { %2789 = vmax.xlane.f32.xlu1 %v2788_v54  ;;  %v2946_v25 = vpop.f32.mrb[30].mxu0 }
0x1658   :  { %v2947_v27 = vadd.f32 %v2946_v25, %v4954_v33  ;;  %v4381_v14 = vpop.f32.mrb[31].mxu0 }
0x165a   :  { %v2950_v50 = vsel %vm261_vm4, %v2947_v27, -inf }
0x165b   :  { %2951 = vmax.xlane.f32.xlu0 %v2950_v50  ;;  %v3112_v37 = vpop.f32.mrb[32].mxu0 }
0x165c   :  { %v3113_v45 = vadd.f32 %v3112_v37, %v4954_v33  ;;  %v4391_v56 = vpop.f32.mrb[33].mxu0 }
0x165e   :  { %v3116_v57 = vsel %vm261_vm4, %v3113_v45, -inf }
0x165f   :  { %3117 = vmax.xlane.f32.xlu1 %v3116_v57  ;;  %v3277_v58 = vpop.f32.mrb[34].mxu0 }
0x1660   :  { %v3278_v59 = vadd.f32 %v3277_v58, %v4954_v33  ;;  %v4401_v60 = vpop.f32.mrb[35].mxu0 }
0x1662   :  { %v3281_v62 = vsel %vm261_vm4, %v3278_v59, -inf }
0x1663   :  { %3282 = vmax.xlane.f32.xlu0 %v3281_v62 }
0x1670   :  { %2454 = vrot.lane.b32.xlu1 %v5363_v1, %s4796_s17 }
0x1674   :  { %2619 = vrot.lane.b32.xlu1 %v5363_v1, %s4798_s19 }
0x1679   :  { %2289 = vrot.lane.b32.xlu0 %v5363_v1, %s4795_s0 }
0x16d8   :  { %v2279_v0 = vpop.xlane.xlu1 %2278 }
0x16d9   :  { %v2280_v34 = vsub.f32 %v2274_v38, %v2279_v0 }
0x16db   :  { %v2281_v29 = vmul.f32 1.442695, %v2280_v34 }
0x16dc   :  { %v2445_v2 = vpop.xlane.xlu0 %2444 }
0x16dd   :  { %4731 = vpow2.f32 %v2281_v29  ;;  %v2446_v3 = vsub.f32 %v2440_v44, %v2445_v2 }
0x16df   :  { %v2447_v33 = vmul.f32 1.442695, %v2446_v3 }
0x16e0   :  { %v2610_v4 = vpop.xlane.xlu0 %2609 }
0x16e1   :  { %4733 = vpow2.f32 %v2447_v33  ;;  %v2611_v61 = vsub.f32 %v2605_v49, %v2610_v4  ;;  %v3971_v33 = vld [vmem:[%s5680_s4 + $0x40] sm:$0xff]  ;;  %v3972_v4 = vld [vmem:[%s5680_s4 + $0x48] sm:$0xff] }
0x16e3   :  { %v2612_v5 = vmul.f32 1.442695, %v2611_v61 }
0x16e4   :  { %v2790_v6 = vpop.xlane.xlu1 %2789 }
0x16e5   :  { %4735 = vpow2.f32 %v2612_v5  ;;  %v2791_v8 = vsub.f32 %v2785_v52, %v2790_v6  ;;  %v4595_v5 = vpack.c.bf16 %v3972_v4, %v3971_v33  ;;  %v3974_v6 = vld [vmem:[%s5680_s4 + $0x58] sm:$0xff] }
0x16e6   :  { %v3994_v33 = vld [vmem:[%s5684_s8 + $0x78] sm:$0xff] }
0x16e7   :  { %v4732_v9 = vpop.eup %4731  ;;  %v2792_v10 = vmul.f32 1.442695, %v2791_v8  ;;  %4596 = vmatprep.subr.bf16.mxu0 %v4595_v5 }
0x16e8   :  { %v2952_v11 = vpop.xlane.xlu0 %2951  ;;  %v2283_v12 = vsel %vm261_vm4, %v4732_v9, 0.0  ;;  %4598 = vmatpush3.bf16.msra.mxu0 %v4595_v5  ;;  %v4001_v5 = vld [vmem:[%s5686_s10 + $0x90] sm:$0xff] }
0x16e9   :  { %4737 = vpow2.f32 %v2792_v10  ;;  %v2953_v1 = vsub.f32 %v2947_v27, %v2952_v11  ;;  %2284 = vadd.xlane.f32.xlu1 %v2283_v12  ;;  %v3976_v10 = vld [vmem:[%s5680_s4 + $0x68] sm:$0xff] }
0x16eb   :  { %v4734_v13 = vpop.eup %4733  ;;  %v2954_v15 = vmul.f32 1.442695, %v2953_v1 }
0x16ec   :  { %v2449_v16 = vsel %vm261_vm4, %v4734_v13, 0.0  ;;  %v3118_v35 = vpop.xlane.xlu1 %3117 }
0x16ed   :  { %4739 = vpow2.f32 %v2954_v15  ;;  %2450 = vadd.xlane.f32.xlu0 %v2449_v16  ;;  %v3119_v38 = vsub.f32 %v3113_v45, %v3118_v35 }
0x16ef   :  { %v4736_v17 = vpop.eup %4735  ;;  %v3120_v39 = vmul.f32 1.442695, %v3119_v38 }
0x16f0   :  { %v3283_v18 = vpop.xlane.xlu0 %3282  ;;  %v2614_v19 = vsel %vm261_vm4, %v4736_v17, 0.0  ;;  %v2455_v44 = vpop.permute.xlu1 %2454 }
0x16f1   :  { %v3284_v20 = vsub.f32 %v3278_v59, %v3283_v18  ;;  %2615 = vadd.xlane.f32.xlu1 %v2614_v19  ;;  %v3977_v18 = vld [vmem:[%s5680_s4 + $0x70] sm:$0xff]  ;;  %v3978_v19 = vld [vmem:[%s5680_s4 + $0x78] sm:$0xff] }
0x16f3   :  { %v4738_v21 = vpop.eup %4737  ;;  %v3285_v22 = vmul.f32 1.442695, %v3284_v20  ;;  %v4607_v20 = vpack.c.bf16 %v3978_v19, %v3977_v18  ;;  %v4009_v19 = vld [vmem:[%s5686_s10 + $0xd0] sm:$0xff] }
0x16f4   :  { %v2290_v23 = vpop.permute.xlu0 %2289  ;;  %v2794_v24 = vsel %vm261_vm4, %v4738_v21, 0.0  ;;  %v2620_v46 = vpop.permute.xlu1 %2619 }
0x16f5   :  { %4741 = vpow2.f32 %v3285_v22  ;;  %2795 = vadd.xlane.f32.xlu0 %v2794_v24  ;;  %4343 = vmatpush3.msra.mxu1 %v2290_v23 }
0x16f6   :  { %4352 = vmatprep.subr.mxu1 %v4791_v7  ;;  %4743 = vpow2.f32 %v3120_v39 }
0x16f7   :  { %v4740_v26 = vpop.eup %4739 }
0x16f8   :  { %v2956_v28 = vsel %vm261_vm4, %v4740_v26, 0.0 }
0x16f9   :  { %2957 = vadd.xlane.f32.xlu1 %v2956_v28 }
0x16ff   :  { %v5442_v30 = vpop.eup %4741 }
0x1700   :  { %v3287_v32 = vsel %vm261_vm4, %v5442_v30, 0.0  ;;  %v4744_v41 = vpop.eup %4743 }
0x1701   :  { %3288 = vadd.xlane.f32.xlu1 %v3287_v32  ;;  %v3122_v42 = vsel %vm261_vm4, %v4744_v41, 0.0 }
0x170b   :  { %2962 = vrot.lane.b32.xlu0 %v5352_v63, %s4795_s0 }
0x1712   :  { %3127 = vrot.lane.b32.xlu1 %v5352_v63, %s4796_s17 }
0x172a   :  { %3123 = vadd.xlane.f32.xlu0 %v3122_v42 }
0x1740   :  { %3292 = vrot.lane.b32.xlu0 %v5352_v63, %s4798_s19 }
0x1776   :  { %v2285_v47 = vpop.xlane.xlu1 %2284 }
0x1777   :  { %4745 = vrcp.f32 %v2285_v47 }
0x177a   :  { %v2451_v48 = vpop.xlane.xlu0 %2450 }
0x177b   :  { %4747 = vrcp.f32 %v2451_v48 }
0x177e   :  { %v2616_v49 = vpop.xlane.xlu1 %2615 }
0x177f   :  { %4749 = vrcp.f32 %v2616_v49 }
0x1781   :  { %v4746_v43 = vpop.eup %4745 }
0x1782   :  { %v2287_v51 = vmul.f32 %v4746_v43, %v4732_v9  ;;  %v2796_v36 = vpop.xlane.xlu0 %2795  ;;  %v3975_v9 = vld [vmem:[%s5680_s4 + $0x60] sm:$0xff] }
0x1783   :  { %4751 = vrcp.f32 %v2796_v36  ;;  %v4603_v1 = vpack.c.bf16 %v3976_v10, %v3975_v9  ;;  %v4003_v10 = vld [vmem:[%s5686_s10 + $0xa0] sm:$0xff] }
0x1784   :  { %4345 = vmatmul.mubr.msk.f32.vlgmr.msra.gmra.mrb[28].mxu1 %vm261_vm4, %v2287_v51 }
0x1785   :  { %v4748_v52 = vpop.eup %4747  ;;  %4353 = vmatpush3.msra.mxu1 %v2455_v44  ;;  %4354 = vmatprep.mubr.msk.f32.mxu1 %vm4792_vm2, %v4791_v7 }
0x1786   :  { %v2453_v53 = vmul.f32 %v4748_v52, %v4734_v13  ;;  %v2958_v54 = vpop.xlane.xlu1 %2957  ;;  %4362 = vmatprep.subr.mxu1 %v4791_v7  ;;  %v2963_v45 = vpop.permute.xlu0 %2962 }
0x1787   :  { %4753 = vrcp.f32 %v2958_v54 }
0x1788   :  { %4355 = vmatmul.mubr.msk.f32.vlgmr.msra.gmra.mrb[30].mxu1 %vm261_vm4, %v2453_v53 }
0x1789   :  { %v4750_v25 = vpop.eup %4749  ;;  %4363 = vmatpush3.msra.mxu1 %v2620_v46  ;;  %4364 = vmatprep.mubr.msk.f32.mxu1 %vm4792_vm2, %v4791_v7 }
0x178a   :  { %v2618_v27 = vmul.f32 %v4750_v25, %v4736_v17  ;;  %4372 = vmatprep.subr.mxu1 %v4791_v7 }
0x178c   :  { %4365 = vmatmul.mubr.msk.f32.vlgmr.msra.gmra.mrb[32].mxu1 %vm261_vm4, %v2618_v27 }
0x178d   :  { %v4752_v14 = vpop.eup %4751  ;;  %4373 = vmatpush3.msra.mxu1 %v5352_v63  ;;  %4374 = vmatprep.mubr.msk.f32.mxu1 %vm4792_vm2, %v4791_v7 }
0x178e   :  { %v2798_v50 = vmul.f32 %v4752_v14, %v4738_v21  ;;  %v3289_v37 = vpop.xlane.xlu1 %3288  ;;  %4382 = vmatprep.subr.mxu1 %v4791_v7 }
0x1790   :  { %4375 = vmatmul.mubr.msk.f32.vlgmr.msra.gmra.mrb[34].mxu1 %vm261_vm4, %v2798_v50 }
0x1791   :  { %v4754_v56 = vpop.eup %4753  ;;  %4383 = vmatpush3.msra.mxu1 %v2963_v45  ;;  %4384 = vmatprep.mubr.msk.f32.mxu1 %vm4792_vm2, %v4791_v7 }
0x1792   :  { %v2960_v57 = vmul.f32 %v4754_v56, %v4740_v26  ;;  %v3128_v58 = vpop.permute.xlu1 %3127  ;;  %4392 = vmatprep.subr.mxu1 %v4791_v7 }
0x1794   :  { %4385 = vmatmul.mubr.msk.f32.vlgmr.msra.gmra.mrb[36].mxu1 %vm261_vm4, %v2960_v57 }
0x1795   :  { %4393 = vmatpush3.msra.mxu1 %v3128_v58  ;;  %4394 = vmatprep.mubr.msk.f32.mxu1 %vm4792_vm2, %v4791_v7  ;;  %v3987_v58 = vld [vmem:[%s5684_s8 + $0x40] sm:$0xff] }
0x1796   :  { %4402 = vmatprep.subr.mxu1 %v4791_v7 }
0x17b7   :  { %v3124_v63 = vpop.xlane.xlu0 %3123 }
0x17b8   :  { %4755 = vrcp.f32 %v3124_v63  ;;  %v3988_v63 = vld [vmem:[%s5684_s8 + $0x48] sm:$0xff] }
0x17b9   :  { %4757 = vrcp.f32 %v3289_v37 }
0x17bb   :  { %v3293_v0 = vpop.permute.xlu0 %3292 }
0x17c2   :  { %v4756_v59 = vpop.eup %4755 }
0x17c3   :  { %v3126_v60 = vmul.f32 %v4756_v59, %v4744_v41  ;;  %v4758_v62 = vpop.eup %4757  ;;  %v4611_v59 = vpack.c.bf16 %v3988_v63, %v3987_v58 }
0x17c4   :  { %v3291_v34 = vmul.f32 %v4758_v62, %v5442_v30  ;;  %v3990_v62 = vld [vmem:[%s5684_s8 + $0x58] sm:$0xff] }
0x17c5   :  { %4395 = vmatmul.mubr.msk.f32.vlgmr.msra.gmra.mrb[38].mxu1 %vm261_vm4, %v3126_v60  ;;  %v3989_v60 = vld [vmem:[%s5684_s8 + $0x50] sm:$0xff] }
0x17c6   :  { %4403 = vmatpush3.msra.mxu1 %v3293_v0  ;;  %4404 = vmatprep.mubr.msk.f32.mxu1 %vm4792_vm2, %v4791_v7  ;;  %v3973_v7 = vld [vmem:[%s5680_s4 + $0x50] sm:$0xff]  ;;  %v4615_v0 = vpack.c.bf16 %v3990_v62, %v3989_v60 }
0x17c7   :  { %v4599_v8 = vpack.c.bf16 %v3974_v6, %v3973_v7  ;;  %4612 = vmatprep.subr.bf16.mxu1 %v4611_v59  ;;  %v3999_v7 = vld [vmem:[%s5686_s10 + $0x80] sm:$0xff] }
0x17c9   :  { %4405 = vmatmul.mubr.msk.f32.vlgmr.msra.gmra.mrb[40].mxu1 %vm261_vm4, %v3291_v34  ;;  %4600 = vmatprep.subr.bf16.mxu0 %v4599_v8  ;;  %v3991_v34 = vld [vmem:[%s5684_s8 + $0x60] sm:$0xff] }
0x17ca   :  { %4602 = vmatpush3.bf16.msra.mxu0 %v4599_v8  ;;  %4614 = vmatpush3.bf16.msra.mxu1 %v4611_v59  ;;  %v4002_v8 = vld [vmem:[%s5686_s10 + $0x98] sm:$0xff] }
0x17cb   :  { %4604 = vmatprep.subr.bf16.mxu0 %v4603_v1  ;;  %4616 = vmatprep.subr.bf16.mxu1 %v4615_v0  ;;  %v4631_v9 = vpack.c.bf16 %v4002_v8, %v4001_v5  ;;  %v3777_v5 = vld [vmem:[%s5690_s14] sm:$0xff] }
0x17ce   :  { %4606 = vmatpush3.bf16.msra.mxu0 %v4603_v1  ;;  %4618 = vmatpush3.bf16.msra.mxu1 %v4615_v0  ;;  %v4005_v1 = vld [vmem:[%s5686_s10 + $0xb0] sm:$0xff] }
0x17cf   :  { %4608 = vmatprep.subr.bf16.mxu0 %v4607_v20 }
0x17d2   :  { %4610 = vmatpush3.bf16.msra.mxu0 %v4607_v20  ;;  %v4010_v20 = vld [vmem:[%s5686_s10 + $0xd8] sm:$0xff] }
0x1857   :  { %v2361_v29 = vpop.f32.mrb[28].mxu1 }
0x1858   :  { %2696 = vrot.lane.b32.xlu1 %v2361_v29, %s4799_s20  ;;  %v4346_v2 = vpop.f32.mrb[29].mxu1  ;;  %v3992_v29 = vld [vmem:[%s5684_s8 + $0x68] sm:$0xff] }
0x1859   :  { %v4619_v2 = vpack.c.bf16 %v3992_v29, %v3991_v34 }
0x185b   :  { %v2526_v3 = vpop.f32.mrb[30].mxu1  ;;  %4620 = vmatprep.subr.bf16.mxu1 %v4619_v2 }
0x185c   :  { %2700 = vrot.lane.b32.xlu0 %v2526_v3, %s4797_s18  ;;  %v4356_v61 = vpop.f32.mrb[31].mxu1  ;;  %v3993_v3 = vld [vmem:[%s5684_s8 + $0x70] sm:$0xff]  ;;  %4622 = vmatpush3.bf16.msra.mxu1 %v4619_v2 }
0x185d   :  { %v4623_v4 = vpack.c.bf16 %v3994_v33, %v3993_v3  ;;  %v4000_v61 = vld [vmem:[%s5686_s10 + $0x88] sm:$0xff] }
0x185e   :  { %v4627_v6 = vpack.c.bf16 %v4000_v61, %v3999_v7 }
0x185f   :  { %v2691_v11 = vpop.f32.mrb[32].mxu1  ;;  %4624 = vmatprep.subr.bf16.mxu1 %v4623_v4 }
0x1860   :  { %2704 = vrot.lane.b32.xlu0 %v2691_v11, %s5698_s3  ;;  %v4366_v12 = vpop.f32.mrb[33].mxu1  ;;  %4626 = vmatpush3.bf16.msra.mxu1 %v4623_v4  ;;  %v4004_v11 = vld [vmem:[%s5686_s10 + $0xa8] sm:$0xff] }
0x1861   :  { %4628 = vmatprep.subr.bf16.mxu0 %v4627_v6  ;;  %v4635_v12 = vpack.c.bf16 %v4004_v11, %v4003_v10  ;;  %v3780_v10 = vld [vmem:[%s5690_s14 + $0x18] sm:$0xff] }
0x1863   :  { %v2868_v13 = vpop.f32.mrb[34].mxu1 }
0x1864   :  { %v4376_v15 = vpop.f32.mrb[35].mxu1 }
0x1867   :  { %v3034_v16 = vpop.f32.mrb[36].mxu1 }
0x1868   :  { %3369 = vrot.lane.b32.xlu1 %v3034_v16, %s4799_s20  ;;  %v4386_v17 = vpop.f32.mrb[37].mxu1  ;;  %v4007_v16 = vld [vmem:[%s5686_s10 + $0xc0] sm:$0xff] }
0x1869   :  { %v4008_v17 = vld [vmem:[%s5686_s10 + $0xc8] sm:$0xff] }
0x186a   :  { %v4643_v18 = vpack.c.bf16 %v4008_v17, %v4007_v16  ;;  %v3784_v16 = vld [vmem:[%s5690_s14 + $0x38] sm:$0xff] }
0x1898   :  { %v3199_v21 = vpop.f32.mrb[38].mxu1 }
0x1899   :  { %3373 = vrot.lane.b32.xlu1 %v3199_v21, %s4797_s18  ;;  %v4396_v22 = vpop.f32.mrb[39].mxu1  ;;  %v4647_v21 = vpack.c.bf16 %v4010_v20, %v4009_v19 }
0x189a   :  { %v4011_v22 = vld [vmem:[%s5686_s10 + $0xe0] sm:$0xff] }
0x189c   :  { %v3364_v23 = vpop.f32.mrb[40].mxu1 }
0x189d   :  { %3377 = vrot.lane.b32.xlu0 %v3364_v23, %s5698_s3  ;;  %v4406_v24 = vpop.f32.mrb[41].mxu1  ;;  %v4012_v23 = vld [vmem:[%s5686_s10 + $0xe8] sm:$0xff] }
0x189e   :  { %v4651_v24 = vpack.c.bf16 %v4012_v23, %v4011_v22 }
0x18ca   :  { %v2697_v26 = vpop.permute.xlu1 %2696 }
0x18cb   :  { %v2707_v30 = vsel %vm185_vm3, %v5414_v31, %v2697_v26  ;;  %v3980_v31 = vld [vmem:[%s5681_s5 + $0x1] ss:$0 sm:$0xff] }
0x18ce   :  { %v2701_v28 = vpop.permute.xlu0 %2700 }
0x18cf   :  { %v2708_v32 = vsel %vm855_vm5, %v2707_v30, %v2701_v28 }
0x18d2   :  { %v2705_v35 = vpop.permute.xlu0 %2704 }
0x18d3   :  { %v2709_v38 = vsel %vm857_vm6, %v2708_v32, %v2705_v35 }
0x18d4   :  { %4423 = vmatprep.mubr.msk.f32.mxu0 %vm91_vm0, %v2709_v38 }
0x18da   :  { %v3370_v39 = vpop.permute.xlu1 %3369 }
0x18db   :  { %v3380_v42 = vsel %vm185_vm3, %v2868_v13, %v3370_v39  ;;  %v4006_v13 = vld [vmem:[%s5686_s10 + $0xb8] sm:$0xff] }
0x18dc   :  { %v4639_v15 = vpack.c.bf16 %v4006_v13, %v4005_v1  ;;  %v3782_v1 = vld [vmem:[%s5690_s14 + $0x28] sm:$0xff] }
0x190b   :  { %v3374_v41 = vpop.permute.xlu1 %3373 }
0x190c   :  { %v3381_v44 = vsel %vm855_vm5, %v3380_v42, %v3374_v41  ;;  %v3985_v41 = vld [vmem:[%s5682_s6 + $0x1] ss:$0 sm:$0xff] }
0x190f   :  { %v3378_v46 = vpop.permute.xlu0 %3377 }
0x1910   :  { %v3382_v47 = vsel %vm857_vm6, %v3381_v44, %v3378_v46 }
0x1911   :  { %4424 = vmatmul.mubr.msk.f32.vlgmr.msra.gmra.mrb[36].mxu0 %vm91_vm0, %v3382_v47  ;;  %v3986_v47 = vld [vmem:[%s5683_s7 + $0x1] ss:$0 sm:$0xff] }
0x1912   :  { %4630 = vmatpush3.bf16.msra.mxu0 %v4627_v6  ;;  %v3778_v6 = vld [vmem:[%s5690_s14 + $0x8] sm:$0xff] }
0x1913   :  { %4632 = vmatprep.subr.bf16.mxu0 %v4631_v9  ;;  %v4659_v8 = vpack.c.bf16 %v3778_v6, %v3777_v5 }
0x1915   :  { %4660 = vmatprep.subr.bf16.mxu1 %v4659_v8 }
0x1916   :  { %4634 = vmatpush3.bf16.msra.mxu0 %v4631_v9  ;;  %v3779_v9 = vld [vmem:[%s5690_s14 + $0x10] sm:$0xff] }
0x1917   :  { %4636 = vmatprep.subr.bf16.mxu0 %v4635_v12  ;;  %v4663_v11 = vpack.c.bf16 %v3780_v10, %v3779_v9 }
0x191a   :  { %4638 = vmatpush3.bf16.msra.mxu0 %v4635_v12  ;;  %v3781_v12 = vld [vmem:[%s5690_s14 + $0x20] sm:$0xff] }
0x191b   :  { %4640 = vmatprep.subr.bf16.mxu0 %v4639_v15  ;;  %v4667_v13 = vpack.c.bf16 %v3782_v1, %v3781_v12 }
0x191e   :  { %4642 = vmatpush3.bf16.msra.mxu0 %v4639_v15  ;;  %v3783_v15 = vld [vmem:[%s5690_s14 + $0x30] sm:$0xff] }
0x191f   :  { %4644 = vmatprep.subr.bf16.mxu0 %v4643_v18  ;;  %v4671_v17 = vpack.c.bf16 %v3784_v16, %v3783_v15 }
0x1922   :  { %4646 = vmatpush3.bf16.msra.mxu0 %v4643_v18 }
0x1923   :  { %4648 = vmatprep.subr.bf16.mxu0 %v4647_v21 }
0x1926   :  { %4650 = vmatpush3.bf16.msra.mxu0 %v4647_v21 }
0x1927   :  { %4652 = vmatprep.subr.bf16.mxu0 %v4651_v24 }
0x192a   :  { %4654 = vmatpush3.bf16.msra.mxu0 %v4651_v24 }
0x19e4   :  { %v4425_v48 = vpop.f32.mrb[36].mxu0 }
0x19e5   :  { %v3478_v49 = vadd.f32 %v4425_v48, %v3980_v31  ;;  %v3472_v43 = vpop.f32.mrb[37].mxu0 }
0x19e6   :  { %v3473_v51 = vadd.f32 %v3980_v31, %v3472_v43 }
0x19e7   :  { %v3482_v36 = vadd.f32 %v3478_v49, %v5340_v55 }
0x19e8   :  { %v3481_v52 = vadd.f32 %v3473_v51, %v5335_v40  ;;  %v4013_v51 = vld [vmem:[%s5686_s10 + $0xf0] sm:$0xff] }
0x19e9   :  { %v3490_v53 = vsel %vm91_vm0, %v3482_v36, 0.0 }
0x19ea   :  { %3491 = vadd.xlane.f32.xlu0 %v3490_v53  ;;  %v3487_v54 = vsel %vm91_vm0, %v3481_v52, 0.0  ;;  %v3996_v53 = vld [vmem:[%s5685_s9 + $0x1] ss:$0 sm:$0xff] }
0x19eb   :  { %3488 = vadd.xlane.f32.xlu1 %v3487_v54 }
0x1a77   :  { %v3492_v25 = vpop.xlane.xlu0 %3491 }
0x1a78   :  { %v3494_v27 = vmul.f32 0.015625, %v3492_v25  ;;  %v3489_v14 = vpop.xlane.xlu1 %3488 }
0x1a79   :  { %v3493_v50 = vmul.f32 0.015625, %v3489_v14 }
0x1a7a   :  { %v5525_v37 = vsub.f32 %v3482_v36, %v3494_v27  ;;  %v4014_v36 = vld [vmem:[%s5686_s10 + $0xf8] sm:$0xff] }
0x1a7b   :  { %v5527_v45 = vsub.f32 %v3481_v52, %v3493_v50  ;;  %v4655_v52 = vpack.c.bf16 %v4014_v36, %v4013_v51 }
0x1a7c   :  { %v3498_v56 = vmul.f32 %v5525_v37, %v5525_v37 }
0x1a7d   :  { %v3497_v40 = vmul.f32 %v5527_v45, %v5527_v45  ;;  %4656 = vmatprep.subr.bf16.mxu0 %v4655_v52 }
0x1a7e   :  { %v3502_v55 = vsel %vm91_vm0, %v3498_v56, 0.0  ;;  %4658 = vmatpush3.bf16.msra.mxu0 %v4655_v52 }
0x1a7f   :  { %3503 = vadd.xlane.f32.xlu1 %v3502_v55  ;;  %v3499_v57 = vsel %vm91_vm0, %v3497_v40, 0.0 }
0x1a80   :  { %3500 = vadd.xlane.f32.xlu0 %v3499_v57 }
0x1b0c   :  { %v3504_v26 = vpop.xlane.xlu1 %3503 }
0x1b0d   :  { %v3506_v28 = vmul.f32 0.015625, %v3504_v26  ;;  %v3501_v30 = vpop.xlane.xlu0 %3500  ;;  %v4019_v26 = vld [vmem:[%s5688_s12 + $0x1] ss:$0 sm:$0xff]  ;;  %s4800_s12 = smov [#allocation2]  }
0x1b0e   :  { %v3505_v32 = vmul.f32 0.015625, %v3501_v30  ;;  %s3880_s28 = sshll.u32 %s4800_s12, 4  ;;  %s3881_s28 = int_to_ptr.vmem [resolvable:$true] %s3880_s28 }
0x1b0f   :  { %v3508_v35 = vadd.f32 1e-05, %v3506_v28  ;;  %p4772_p1 = scmp.lt.s32.totalorder %s3881_s28, %s3881_s28 }
0x1b10   :  { %v3507_v38 = vadd.f32 1e-05, %v3505_v32 }
0x1b11   :  { %4759 = vrsqrt.f32 %v3508_v35  ;;  %v4020_v35 = vld [vmem:[%s5689_s13 + $0x1] ss:$0 sm:$0xff]  ;;  %s4767_s13 = scalar_lea.vmem %s3881_s28, 256 }
0x1b12   :  { %4761 = vrsqrt.f32 %v3507_v38  ;;  %p4768_p0 = scmp.ne.s32.totalorder %s3881_s28, %s4767_s13  ;;  %p4773_p2 = scmp.lt.s32.totalorder %s4767_s13, %s4767_s13 }
0x1b14   :  { %p4774_p3 = por %p4773_p2, %p4772_p1 }
0x1b16   :  { %p4775_p4 = pnand %p4774_p3, %p4768_p0 }
0x1b1b   :  { %v4760_v39 = vpop.eup %4759 }
0x1b1c   :  { %v4762_v42 = vpop.eup %4761  ;;  %v3512_v44 = vmul.f32 %v4760_v39, %v5525_v37 }
0x1b1d   :  { %v3511_v46 = vmul.f32 %v4762_v42, %v5527_v45  ;;  %v4016_v45 = vld [vmem:[%s5687_s11 + $0x1] ss:$0 sm:$0xff] }
0x1b1e   :  { %v3520_v31 = vmul.f32 %v3985_v41, %v3512_v44  ;;  %v4021_v44 = vld [vmem:[%s5691_s15] ss:$0 sm:$0xff] }
0x1b1f   :  { %v3519_v48 = vmul.f32 %v3985_v41, %v3511_v46 }
0x1b20   :  { %v3528_v43 = vadd.f32 %v3986_v47, %v3520_v31 }
0x1b21   :  { %v3527_v49 = vadd.f32 %v3986_v47, %v3519_v48 }
0x1b23   :  { %4442 = vmatprep.mubr.msk.f32.mxu1 %vm91_vm0, %v3527_v49 }
0x1b24   :  { %4443 = vmatmul.mubr.msk.f32.vlgmr.msra.gmra.mrb[42].mxu1 %vm91_vm0, %v3528_v43 }
0x1b25   :  { %4662 = vmatpush3.bf16.msra.mxu1 %v4659_v8 }
0x1b26   :  { %4664 = vmatprep.subr.bf16.mxu1 %v4663_v11 }
0x1b29   :  { %4666 = vmatpush3.bf16.msra.mxu1 %v4663_v11 }
0x1b2a   :  { %4668 = vmatprep.subr.bf16.mxu1 %v4667_v13 }
0x1b2d   :  { %4670 = vmatpush3.bf16.msra.mxu1 %v4667_v13 }
0x1b2e   :  { %4672 = vmatprep.subr.bf16.mxu1 %v4671_v17 }
0x1b31   :  { %4674 = vmatpush3.bf16.msra.mxu1 %v4671_v17 }
0x1bf7   :  { %v4444_v54 = vpop.f32.mrb[42].mxu1 }
0x1bf8   :  { %v3624_v25 = vadd.f32 %v4444_v54, %v3996_v53  ;;  %v3618_v27 = vpop.f32.mrb[43].mxu1 }
0x1bf9   :  { %v3619_v14 = vadd.f32 %v3996_v53, %v3618_v27 }
0x1bfa   :  { %v3628_v37 = vmax.f32 %v3624_v25, 0.0 }
0x1bfb   :  { %v3627_v50 = vmax.f32 %v3619_v14, 0.0 }
0x1bfd   :  { %4477 = vmatprep.mubr.f32.mxu0 %v3627_v50 }
0x1bfe   :  { %4478 = vmatmul.mubr.f32.vlgmr.msra.gmra.mrb[38].mxu0 %v3628_v37 }
0x1cd1   :  { %v4479_v56 = vpop.f32.mrb[38].mxu0 }
0x1cd2   :  { %v3726_v40 = vadd.f32 %v4479_v56, %v4016_v45  ;;  %v3720_v55 = vpop.f32.mrb[39].mxu0 }
0x1cd3   :  { %v3721_v57 = vadd.f32 %v4016_v45, %v3720_v55 }
0x1cd4   :  { %v3730_v58 = vadd.f32 %v3726_v40, %v3528_v43 }
0x1cd5   :  { %v3729_v63 = vadd.f32 %v3721_v57, %v3527_v49 }
0x1cd6   :  { %v3738_v59 = vsel %vm91_vm0, %v3730_v58, 0.0 }
0x1cd7   :  { %3739 = vadd.xlane.f32.xlu1 %v3738_v59  ;;  %v3735_v60 = vsel %vm91_vm0, %v3729_v63, 0.0 }
0x1cd8   :  { %3736 = vadd.xlane.f32.xlu0 %v3735_v60 }
0x1d64   :  { %v3740_v62 = vpop.xlane.xlu1 %3739 }
0x1d65   :  { %v3742_v0 = vmul.f32 0.015625, %v3740_v62  ;;  %v3737_v34 = vpop.xlane.xlu0 %3736 }
0x1d66   :  { %v3741_v29 = vmul.f32 0.015625, %v3737_v34 }
0x1d67   :  { %v3744_v2 = vsub.f32 %v3730_v58, %v3742_v0 }
0x1d68   :  { %v3743_v3 = vsub.f32 %v3729_v63, %v3741_v29 }
0x1d69   :  { %v3746_v33 = vmul.f32 %v3744_v2, %v3744_v2 }
0x1d6a   :  { %v3745_v4 = vmul.f32 %v3743_v3, %v3743_v3 }
0x1d6b   :  { %v3750_v7 = vsel %vm91_vm0, %v3746_v33, 0.0 }
0x1d6c   :  { %3751 = vadd.xlane.f32.xlu1 %v3750_v7  ;;  %v3747_v61 = vsel %vm91_vm0, %v3745_v4, 0.0 }
0x1d6d   :  { %3748 = vadd.xlane.f32.xlu0 %v3747_v61 }
0x1df9   :  { %v3752_v18 = vpop.xlane.xlu1 %3751 }
0x1dfa   :  { %v3754_v19 = vmul.f32 0.015625, %v3752_v18  ;;  %v3749_v20 = vpop.xlane.xlu0 %3748 }
0x1dfb   :  { %v3753_v21 = vmul.f32 0.015625, %v3749_v20 }
0x1dfc   :  { %v3756_v22 = vadd.f32 1e-05, %v3754_v19 }
0x1dfd   :  { %v3755_v23 = vadd.f32 1e-05, %v3753_v21 }
0x1dfe   :  { %4763 = vrsqrt.f32 %v3756_v22 }
0x1dff   :  { %4765 = vrsqrt.f32 %v3755_v23 }
0x1e08   :  { %v4764_v24 = vpop.eup %4763 }
0x1e09   :  { %v4766_v28 = vpop.eup %4765  ;;  %v3760_v30 = vmul.f32 %v4764_v24, %v3744_v2 }
0x1e0a   :  { %v3759_v32 = vmul.f32 %v4766_v28, %v3743_v3 }
0x1e0b   :  { %v3768_v38 = vmul.f32 %v4019_v26, %v3760_v30 }
0x1e0c   :  { %v3767_v39 = vmul.f32 %v4019_v26, %v3759_v32 }
0x1e0d   :  { %v3776_v42 = vadd.f32 %v4020_v35, %v3768_v38 }
0x1e0e   :  { %v3775_v41 = vadd.f32 %v4020_v35, %v3767_v39 }
0x1e10   :  { %4496 = vmatprep.mubr.msk.f32.mxu1 %vm91_vm0, %v3775_v41 }
0x1e11   :  { %4497 = vmatmul.mubr.msk.f32.vlgmr.msra.gmra.mrb[44].mxu1 %vm91_vm0, %v3776_v42 }
0x1ee4   :  { %v4498_v46 = vpop.f32.mrb[44].mxu1 }
0x1ee5   :  { %v3870_v47 = vadd.f32 %v4498_v46, %v4021_v44  ;;  %v3864_v31 = vpop.f32.mrb[45].mxu1 }
0x1ee6   :  { %v3865_v48 = vadd.f32 %v4021_v44, %v3864_v31 }
0x1ee7   :  { %3874 = vst.msk [vmem:[#allocation2 + $0x8] sm:$0xff] %vm855_vm5, %v3870_v47 }
0x1ee8   :  { %3873 = vst.msk [vmem:[#allocation2] sm:$0xff] %vm855_vm5, %v3865_v48 }
0x1ee9   :  { %4778 = shalt.err (!%p4775_p4)
}
0x1eea   :  { %s4779_s29 = scalar_lea.hbm %s5692_s16, 256 }
0x1eeb   :  { %p4780_p5 = scmp.ne.s32.totalorder %s5692_s16, %s4779_s29  ;;  %p4783_p6 = scmp.lt.u32.totalorder %s4779_s29, %s5692_s16 }
0x1eed   :  { %p4785_p7 = pnand %p4783_p6, %p4780_p5 }
0x1eef   :  { %4788 = shalt.err (!%p4785_p7)
}
0x1ef0   :  { %s4801_s11 = smov 128   ;;  %s4802_s23 = smov 8  }
0x1ef1   :  { %3886 = dma.vmem_to_hbm [thread:$0]  %s3881_s28, 256, %s5692_s16, [#allocation3], %s4801_s11, %s4801_s11, %s4802_s23  }
0x1ef2   :  { %4789 = dma.done.wait [#allocation3], 256  }
0x1ef3   :  { %4790 = vsyncadd [#allocation3], 4294967040 }
0x1ef4   :  { %3890 = vsyncpa [#allocation3], 1 }

</bundles_post_ra>
